<compile_context>
chip_gen: v7x
topology: tpu7x:2x2x1
jax: 0.10.0
libtpu: 0.0.40
codegen_flags: <defaults>
</compile_context>

<pallas_src>
import math
import functools

import jax
import jax.numpy as jnp
from jax import lax
from jax.experimental import pallas as pl
from jax.experimental.pallas import tpu as pltpu

# dot_general contracting the LAST dim of both operands: a @ b.T without
# materializing any transpose (the MXU takes the transposed operand directly).
_CONTRACT_LAST = (((1,), (1,)), ((), ()))


def _bf16_dot_t(a, b):
    """f32-accumulated MXU matmul of a (M,K) with b (N,K) -> (M,N)."""
    return lax.dot_general(a.astype(jnp.bfloat16), b.astype(jnp.bfloat16),
                           _CONTRACT_LAST, preferred_element_type=jnp.float32)


# ---------------------- fused multi-head attention kernel ------------------ #
def _mha_kernel(h, dk,
                q_ref, k_ref, v_ref, m_ref,
                wq_ref, bq_ref, wk_ref, bk_ref, wv_ref, bv_ref,
                wo_ref, bo_ref, o_ref):
    S, D = q_ref.shape[1], q_ref.shape[2]
    inv_sqrt_dk = jnp.float32(1.0 / math.sqrt(dk))
    neg_inf = jnp.float32(-1e9)

    # Resident weights (bf16) / biases (f32).
    wq, wk, wv, wo = wq_ref[...], wk_ref[...], wv_ref[...], wo_ref[...]

    # Fused input projections: x read once, lane-dense (S, D) MXU matmuls.
    qf = (_bf16_dot_t(q_ref[0], wq) + bq_ref[...]) * inv_sqrt_dk   # (S, D)
    kf = _bf16_dot_t(k_ref[0], wk) + bk_ref[...]                   # (S, D)
    vf = _bf16_dot_t(v_ref[0], wv) + bv_ref[...]                   # (S, D)

    # int8 mask -> validity predicate (computed once, reused for every head).
    valid = m_ref[0].astype(jnp.float32) != 0.0                    # (S, S)

    # Per-head attention; output projection fused as a per-head rank-dk
    # update so ctx is never gathered into an HBM [B,h,S,dk] tensor.
    acc = jnp.zeros((S, D), jnp.float32)
    for hh in range(h):                       # static unroll (h is small)
        sl = slice(hh * dk, (hh + 1) * dk)
        q_h, k_h, v_h = qf[:, sl], kf[:, sl], vf[:, sl]

        s = _bf16_dot_t(q_h, k_h)             # (S, S) scores, no k.T copy
        s = jnp.where(valid, s, neg_inf)      # masked_fill(mask == 0, -1e9)

        s_max = jnp.max(s, axis=-1, keepdims=True)
        e = jnp.exp(s - s_max)
        l = jnp.sum(e, axis=-1, keepdims=True)
        ctx = lax.dot_general(e.astype(jnp.bfloat16), v_h.astype(jnp.bfloat16),
                              (((1,), (0,)), ((), ())),
                              preferred_element_type=jnp.float32)  # (S, dk)
        ctx = ctx * pl.reciprocal(l, approx=True)

        # out += ctx_h @ Wo[:, head-slice]^T   (lane-dense (S, D) result)
        acc = acc + _bf16_dot_t(ctx, wo[:, sl])

    o_ref[0] = acc + bo_ref[...]


# ------------------------------ wrapper ------------------------------------ #
def multihead_attention(query, key, value, params, mask=None, h=4):
    """Forward pass of MultiHeadedAttention (eval mode; dropout omitted)."""
    B, S, D = query.shape
    assert D % h == 0
    dk = D // h
    wq, bq, wk, bk, wv, bv, wo, bo = params

    # Arbitrary mask supported; carried as int8 (1 byte/elem instead of 4).
    if mask is None:
        mask_i8 = jnp.ones((B, S, S), jnp.int8)
    else:
        mask_i8 = jnp.broadcast_to(mask != 0, (B, S, S)).astype(jnp.int8)

    # Weights stay in PyTorch [out, in] layout (no transposes anywhere);
    # pre-cast once to bf16 so MXU operands and their DMA are half width.
    wq_b, wk_b, wv_b, wo_b = (w.astype(jnp.bfloat16) for w in (wq, wk, wv, wo))
    bq2, bk2, bv2, bo2 = (b.reshape(1, D).astype(jnp.float32)
                          for b in (bq, bk, bv, bo))

    kernel = functools.partial(_mha_kernel, h, dk)

    x_spec = pl.BlockSpec((1, S, D), lambda b: (b, 0, 0))
    m_spec = pl.BlockSpec((1, S, S), lambda b: (b, 0, 0))
    w_spec = pl.BlockSpec((D, D), lambda b: (0, 0))     # resident across grid
    b_spec = pl.BlockSpec((1, D), lambda b: (0, 0))     # resident across grid

    out = pl.pallas_call(
        kernel,
        out_shape=jax.ShapeDtypeStruct((B, S, D), jnp.float32),
        grid=(B,),
        in_specs=[x_spec, x_spec, x_spec, m_spec,
                  w_spec, b_spec, w_spec, b_spec,
                  w_spec, b_spec, w_spec, b_spec],
        out_specs=x_spec,
        compiler_params=pltpu.CompilerParams(
            dimension_semantics=("parallel",)),
    )(query, key, value, mask_i8, wq_b, bq2, wk_b, bk2, wv_b, bv2, wo_b, bo2)
    return out


# ------------------------- plain-JAX references ----------------------------- #
def _reference_f32(query, key, value, params, mask, h):
    """Exact f32 math of the PyTorch module (eval mode)."""
    B, S, D = query.shape
    dk = D // h
    wq, bq, wk, bk, wv, bv, wo, bo = params

    def proj(x, w, b):
        y = x @ w.T + b
        return y.reshape(B, S, h, dk).transpose(0, 2, 1, 3)

    q, k, v = proj(query, wq, bq), proj(key, wk, bk), proj(value, wv, bv)
    s = jnp.einsum('bhqd,bhkd->bhqk', q, k) / math.sqrt(dk)
    m = jnp.broadcast_to(mask != 0, (B, S, S))[:, None]
    s = jnp.where(m, s, -1e9)
    p = jax.nn.softmax(s, axis=-1)
    ctx = jnp.einsum('bhqk,bhkd->bhqd', p, v)
    x = ctx.transpose(0, 2, 1, 3).reshape(B, S, D)
    return x @ wo.T + bo


def _reference_bf16(query, key, value, params, mask, h):
    """Mirrors the kernel's bf16-operand / f32-accumulate matmul discipline."""
    B, S, D = query.shape
    dk = D // h
    wq, bq, wk, bk, wv, bv, wo, bo = params
    bf = jnp.bfloat16
    inv = jnp.float32(1.0 / math.sqrt(dk))

    def lin(x, w, b):
        y = jnp.einsum('bsi,oi->bso', x.astype(bf), w.astype(bf),
                       preferred_element_type=jnp.float32)
        return y + b

    q = lin(query, wq, bq) * inv
    k = lin(key, wk, bk)
    v = lin(value, wv, bv)

    def heads(x):
        return x.reshape(B, S, h, dk).transpose(0, 2, 1, 3)

    qh, kh, vh = heads(q), heads(k), heads(v)
    s = jnp.einsum('bhqd,bhkd->bhqk', qh.astype(bf), kh.astype(bf),
                   preferred_element_type=jnp.float32)
    m = jnp.broadcast_to(mask != 0, (B, S, S))[:, None]
    s = jnp.where(m, s, -1e9)
    s_max = jnp.max(s, axis=-1, keepdims=True)
    e = jnp.exp(s - s_max)
    l = jnp.sum(e, axis=-1, keepdims=True)
    ctx = jnp.einsum('bhqk,bhkd->bhqd', e.astype(bf), vh.astype(bf),
                     preferred_element_type=jnp.float32) / l
    x = ctx.transpose(0, 2, 1, 3).reshape(B, S, D)
    return jnp.einsum('bsi,oi->bso', x.astype(bf), wo.astype(bf),
                      preferred_element_type=jnp.float32) + bo


if __name__ == "__main__":
    B, S, D, H = 2, 8, 32, 4

    key0 = jax.random.PRNGKey(0)
    ks = jax.random.split(key0, 12)

    scale = 1.0 / math.sqrt(D)
    params = (
        jax.random.normal(ks[0], (D, D), jnp.float32) * scale,   # wq
        jax.random.normal(ks[1], (D,), jnp.float32) * scale,     # bq
        jax.random.normal(ks[2], (D, D), jnp.float32) * scale,   # wk
        jax.random.normal(ks[3], (D,), jnp.float32) * scale,     # bk
        jax.random.normal(ks[4], (D, D), jnp.float32) * scale,   # wv
        jax.random.normal(ks[5], (D,), jnp.float32) * scale,     # bv
        jax.random.normal(ks[6], (D, D), jnp.float32) * scale,   # wo
        jax.random.normal(ks[7], (D,), jnp.float32) * scale,     # bo
    )

    query = jax.random.normal(ks[8], (B, S, D), jnp.float32)
    key_x = jax.random.normal(ks[9], (B, S, D), jnp.float32)
    value = jax.random.normal(ks[10], (B, S, D), jnp.float32)

    # causal ("subsequent") mask, shape [B, S, S]
    causal = jnp.tril(jnp.ones((S, S), jnp.float32))
    mask = jnp.broadcast_to(causal, (B, S, S))

    out = multihead_attention(query, key_x, value, params, mask=mask, h=H)
    out = jax.block_until_ready(out)
    assert out.shape == (B, S, D)

    # Tight check vs a reference that mirrors the kernel's bf16/f32 matmul
    # discipline; loose check vs the pure-f32 PyTorch-equivalent math
    # (tolerance reflects bf16 MXU operands + approx softmax reciprocal).
    ref_bf16 = _reference_bf16(query, key_x, value, params, mask, H)
    ref_f32 = _reference_f32(query, key_x, value, params, mask, H)
    assert jnp.allclose(out, ref_bf16, atol=1e-2, rtol=1e-2), \
        "mismatch vs bf16-matmul reference"
    assert jnp.allclose(out, ref_f32, atol=6e-2, rtol=6e-2), \
        "mismatch vs f32 reference"

    print("KERNEL_OK")
</pallas_src>

<mosaic_0001>
module attributes {stable_mosaic.version = 11 : i64} {
  func.func @_mha_kernel(%arg0: i32, %arg1: memref<1x8x32xf32, #tpu.memory_space<vmem>>, %arg2: memref<1x8x32xf32, #tpu.memory_space<vmem>>, %arg3: memref<1x8x32xf32, #tpu.memory_space<vmem>>, %arg4: memref<1x8x8xi8, #tpu.memory_space<vmem>>, %arg5: memref<32x32xbf16, #tpu.memory_space<vmem>>, %arg6: memref<1x32xf32, #tpu.memory_space<vmem>>, %arg7: memref<32x32xbf16, #tpu.memory_space<vmem>>, %arg8: memref<1x32xf32, #tpu.memory_space<vmem>>, %arg9: memref<32x32xbf16, #tpu.memory_space<vmem>>, %arg10: memref<1x32xf32, #tpu.memory_space<vmem>>, %arg11: memref<32x32xbf16, #tpu.memory_space<vmem>>, %arg12: memref<1x32xf32, #tpu.memory_space<vmem>>, %arg13: memref<1x8x32xf32, #tpu.memory_space<vmem>>) attributes {dimension_semantics = [#tpu.dimension_semantics<parallel>], iteration_bounds = array<i64: 2>, scalar_prefetch = 0 : i64, scratch_operands = 0 : i64, tpu.core_type = #tpu.core_type<tc>, window_params = [{transform_indices = @transform_0, window_bounds = array<i64: 1, 8, 32>}, {transform_indices = @transform_1, window_bounds = array<i64: 1, 8, 32>}, {transform_indices = @transform_2, window_bounds = array<i64: 1, 8, 32>}, {transform_indices = @transform_3, window_bounds = array<i64: 1, 8, 8>}, {pipeline_mode = #tpu.pipeline_mode<synchronous>, transform_indices = @transform_4, window_bounds = array<i64: 32, 32>}, {pipeline_mode = #tpu.pipeline_mode<synchronous>, transform_indices = @transform_5, window_bounds = array<i64: 1, 32>}, {pipeline_mode = #tpu.pipeline_mode<synchronous>, transform_indices = @transform_6, window_bounds = array<i64: 32, 32>}, {pipeline_mode = #tpu.pipeline_mode<synchronous>, transform_indices = @transform_7, window_bounds = array<i64: 1, 32>}, {pipeline_mode = #tpu.pipeline_mode<synchronous>, transform_indices = @transform_8, window_bounds = array<i64: 32, 32>}, {pipeline_mode = #tpu.pipeline_mode<synchronous>, transform_indices = @transform_9, window_bounds = array<i64: 1, 32>}, {pipeline_mode = #tpu.pipeline_mode<synchronous>, transform_indices = @transform_10, window_bounds = array<i64: 32, 32>}, {pipeline_mode = #tpu.pipeline_mode<synchronous>, transform_indices = @transform_11, window_bounds = array<i64: 1, 32>}, {transform_indices = @transform_12, window_bounds = array<i64: 1, 8, 32>}]} {
    %c0 = arith.constant 0 : index
    %c0_0 = arith.constant 0 : index
    %0 = vector.load %arg5[%c0, %c0_0] : memref<32x32xbf16, #tpu.memory_space<vmem>>, vector<32x32xbf16>
    %c0_1 = arith.constant 0 : index
    %c0_2 = arith.constant 0 : index
    %1 = vector.load %arg7[%c0_1, %c0_2] : memref<32x32xbf16, #tpu.memory_space<vmem>>, vector<32x32xbf16>
    %c0_3 = arith.constant 0 : index
    %c0_4 = arith.constant 0 : index
    %2 = vector.load %arg9[%c0_3, %c0_4] : memref<32x32xbf16, #tpu.memory_space<vmem>>, vector<32x32xbf16>
    %c0_5 = arith.constant 0 : index
    %c0_6 = arith.constant 0 : index
    %3 = vector.load %arg11[%c0_5, %c0_6] : memref<32x32xbf16, #tpu.memory_space<vmem>>, vector<32x32xbf16>
    %c0_7 = arith.constant 0 : index
    %c0_8 = arith.constant 0 : index
    %c0_9 = arith.constant 0 : index
    %4 = vector.load %arg1[%c0_7, %c0_8, %c0_9] : memref<1x8x32xf32, #tpu.memory_space<vmem>>, vector<1x8x32xf32>
    %5 = vector.shape_cast %4 : vector<1x8x32xf32> to vector<8x32xf32>
    %6 = arith.truncf %5 : vector<8x32xf32> to vector<8x32xbf16>
    %cst = arith.constant dense<0.000000e+00> : vector<8x32xf32>
    %7 = tpu.matmul %6, %0, %cst {dimension_numbers = #tpu.dot_dimension_numbers<[1], [1], [0], [0], [0, 0, 1, 0], [], []>} : vector<8x32xbf16>, vector<32x32xbf16>, vector<8x32xf32> -> vector<8x32xf32>
    %c0_10 = arith.constant 0 : index
    %c0_11 = arith.constant 0 : index
    %8 = vector.load %arg6[%c0_10, %c0_11] : memref<1x32xf32, #tpu.memory_space<vmem>>, vector<1x32xf32>
    %9 = vector.broadcast %8 : vector<1x32xf32> to vector<8x32xf32>
    %10 = arith.addf %7, %9 : vector<8x32xf32>
    %cst_12 = arith.constant 0.353553385 : f32
    %11 = vector.broadcast %cst_12 : f32 to vector<8x32xf32>
    %12 = arith.mulf %10, %11 : vector<8x32xf32>
    %c0_13 = arith.constant 0 : index
    %c0_14 = arith.constant 0 : index
    %c0_15 = arith.constant 0 : index
    %13 = vector.load %arg2[%c0_13, %c0_14, %c0_15] : memref<1x8x32xf32, #tpu.memory_space<vmem>>, vector<1x8x32xf32>
    %14 = vector.shape_cast %13 : vector<1x8x32xf32> to vector<8x32xf32>
    %15 = arith.truncf %14 : vector<8x32xf32> to vector<8x32xbf16>
    %cst_16 = arith.constant dense<0.000000e+00> : vector<8x32xf32>
    %16 = tpu.matmul %15, %1, %cst_16 {dimension_numbers = #tpu.dot_dimension_numbers<[1], [1], [0], [0], [0, 0, 1, 0], [], []>} : vector<8x32xbf16>, vector<32x32xbf16>, vector<8x32xf32> -> vector<8x32xf32>
    %c0_17 = arith.constant 0 : index
    %c0_18 = arith.constant 0 : index
    %17 = vector.load %arg8[%c0_17, %c0_18] : memref<1x32xf32, #tpu.memory_space<vmem>>, vector<1x32xf32>
    %18 = vector.broadcast %17 : vector<1x32xf32> to vector<8x32xf32>
    %19 = arith.addf %16, %18 : vector<8x32xf32>
    %c0_19 = arith.constant 0 : index
    %c0_20 = arith.constant 0 : index
    %c0_21 = arith.constant 0 : index
    %20 = vector.load %arg3[%c0_19, %c0_20, %c0_21] : memref<1x8x32xf32, #tpu.memory_space<vmem>>, vector<1x8x32xf32>
    %21 = vector.shape_cast %20 : vector<1x8x32xf32> to vector<8x32xf32>
    %22 = arith.truncf %21 : vector<8x32xf32> to vector<8x32xbf16>
    %cst_22 = arith.constant dense<0.000000e+00> : vector<8x32xf32>
    %23 = tpu.matmul %22, %2, %cst_22 {dimension_numbers = #tpu.dot_dimension_numbers<[1], [1], [0], [0], [0, 0, 1, 0], [], []>} : vector<8x32xbf16>, vector<32x32xbf16>, vector<8x32xf32> -> vector<8x32xf32>
    %c0_23 = arith.constant 0 : index
    %c0_24 = arith.constant 0 : index
    %24 = vector.load %arg10[%c0_23, %c0_24] : memref<1x32xf32, #tpu.memory_space<vmem>>, vector<1x32xf32>
    %25 = vector.broadcast %24 : vector<1x32xf32> to vector<8x32xf32>
    %26 = arith.addf %23, %25 : vector<8x32xf32>
    %c0_25 = arith.constant 0 : index
    %c0_26 = arith.constant 0 : index
    %c0_27 = arith.constant 0 : index
    %27 = vector.load %arg4[%c0_25, %c0_26, %c0_27] : memref<1x8x8xi8, #tpu.memory_space<vmem>>, vector<1x8x8xi8>
    %28 = vector.shape_cast %27 : vector<1x8x8xi8> to vector<8x8xi8>
    %29 = arith.sitofp %28 : vector<8x8xi8> to vector<8x8xf32>
    %cst_28 = arith.constant 0.000000e+00 : f32
    %30 = vector.broadcast %cst_28 : f32 to vector<8x8xf32>
    %31 = arith.cmpf one, %29, %30 : vector<8x8xf32>
    %cst_29 = arith.constant 0.000000e+00 : f32
    %32 = vector.broadcast %cst_29 : f32 to vector<8x32xf32>
    %33 = vector.extract_strided_slice %12 {offsets = [0, 0], sizes = [8, 8], strides = [1, 1]} : vector<8x32xf32> to vector<8x8xf32>
    %34 = vector.extract_strided_slice %19 {offsets = [0, 0], sizes = [8, 8], strides = [1, 1]} : vector<8x32xf32> to vector<8x8xf32>
    %35 = vector.extract_strided_slice %26 {offsets = [0, 0], sizes = [8, 8], strides = [1, 1]} : vector<8x32xf32> to vector<8x8xf32>
    %36 = arith.truncf %33 : vector<8x8xf32> to vector<8x8xbf16>
    %37 = arith.truncf %34 : vector<8x8xf32> to vector<8x8xbf16>
    %cst_30 = arith.constant dense<0.000000e+00> : vector<8x8xf32>
    %38 = tpu.matmul %36, %37, %cst_30 {dimension_numbers = #tpu.dot_dimension_numbers<[1], [1], [0], [0], [0, 0, 1, 0], [], []>} : vector<8x8xbf16>, vector<8x8xbf16>, vector<8x8xf32> -> vector<8x8xf32>
    %cst_31 = arith.constant -1.000000e+09 : f32
    %39 = vector.broadcast %cst_31 : f32 to vector<8x8xf32>
    %40 = arith.select %31, %38, %39 : vector<8x8xi1>, vector<8x8xf32>
    %cst_32 = arith.constant dense<0xFF800000> : vector<8xf32>
    %41 = vector.multi_reduction <maximumf>, %40, %cst_32 [1] : vector<8x8xf32> to vector<8xf32>
    %42 = vector.shape_cast %41 : vector<8xf32> to vector<8x1xf32>
    %43 = vector.broadcast %42 : vector<8x1xf32> to vector<8x8xf32>
    %44 = arith.subf %40, %43 : vector<8x8xf32>
    %45 = math.exp %44 : vector<8x8xf32>
    %cst_33 = arith.constant dense<0.000000e+00> : vector<8xf32>
    %46 = vector.multi_reduction <add>, %45, %cst_33 [1] : vector<8x8xf32> to vector<8xf32>
    %47 = vector.shape_cast %46 : vector<8xf32> to vector<8x1xf32>
    %48 = arith.truncf %45 : vector<8x8xf32> to vector<8x8xbf16>
    %49 = arith.truncf %35 : vector<8x8xf32> to vector<8x8xbf16>
    %cst_34 = arith.constant dense<0.000000e+00> : vector<8x8xf32>
    %50 = tpu.matmul %48, %49, %cst_34 {dimension_numbers = #tpu.dot_dimension_numbers<[1], [0], [0], [1], [0, 0, 1, 1], [], []>} : vector<8x8xbf16>, vector<8x8xbf16>, vector<8x8xf32> -> vector<8x8xf32>
    %51 = tpu.reciprocal %47 {approx = true} : vector<8x1xf32> -> vector<8x1xf32>
    %52 = vector.broadcast %51 : vector<8x1xf32> to vector<8x8xf32>
    %53 = arith.mulf %50, %52 : vector<8x8xf32>
    %54 = vector.extract_strided_slice %3 {offsets = [0, 0], sizes = [32, 8], strides = [1, 1]} : vector<32x32xbf16> to vector<32x8xbf16>
    %55 = arith.truncf %53 : vector<8x8xf32> to vector<8x8xbf16>
    %cst_35 = arith.constant dense<0.000000e+00> : vector<8x32xf32>
    %56 = tpu.matmul %55, %54, %cst_35 {dimension_numbers = #tpu.dot_dimension_numbers<[1], [1], [0], [0], [0, 0, 1, 0], [], []>} : vector<8x8xbf16>, vector<32x8xbf16>, vector<8x32xf32> -> vector<8x32xf32>
    %57 = arith.addf %32, %56 : vector<8x32xf32>
    %58 = vector.extract_strided_slice %12 {offsets = [0, 8], sizes = [8, 8], strides = [1, 1]} : vector<8x32xf32> to vector<8x8xf32>
    %59 = vector.extract_strided_slice %19 {offsets = [0, 8], sizes = [8, 8], strides = [1, 1]} : vector<8x32xf32> to vector<8x8xf32>
    %60 = vector.extract_strided_slice %26 {offsets = [0, 8], sizes = [8, 8], strides = [1, 1]} : vector<8x32xf32> to vector<8x8xf32>
    %61 = arith.truncf %58 : vector<8x8xf32> to vector<8x8xbf16>
    %62 = arith.truncf %59 : vector<8x8xf32> to vector<8x8xbf16>
    %cst_36 = arith.constant dense<0.000000e+00> : vector<8x8xf32>
    %63 = tpu.matmul %61, %62, %cst_36 {dimension_numbers = #tpu.dot_dimension_numbers<[1], [1], [0], [0], [0, 0, 1, 0], [], []>} : vector<8x8xbf16>, vector<8x8xbf16>, vector<8x8xf32> -> vector<8x8xf32>
    %cst_37 = arith.constant -1.000000e+09 : f32
    %64 = vector.broadcast %cst_37 : f32 to vector<8x8xf32>
    %65 = arith.select %31, %63, %64 : vector<8x8xi1>, vector<8x8xf32>
    %cst_38 = arith.constant dense<0xFF800000> : vector<8xf32>
    %66 = vector.multi_reduction <maximumf>, %65, %cst_38 [1] : vector<8x8xf32> to vector<8xf32>
    %67 = vector.shape_cast %66 : vector<8xf32> to vector<8x1xf32>
    %68 = vector.broadcast %67 : vector<8x1xf32> to vector<8x8xf32>
    %69 = arith.subf %65, %68 : vector<8x8xf32>
    %70 = math.exp %69 : vector<8x8xf32>
    %cst_39 = arith.constant dense<0.000000e+00> : vector<8xf32>
    %71 = vector.multi_reduction <add>, %70, %cst_39 [1] : vector<8x8xf32> to vector<8xf32>
    %72 = vector.shape_cast %71 : vector<8xf32> to vector<8x1xf32>
    %73 = arith.truncf %70 : vector<8x8xf32> to vector<8x8xbf16>
    %74 = arith.truncf %60 : vector<8x8xf32> to vector<8x8xbf16>
    %cst_40 = arith.constant dense<0.000000e+00> : vector<8x8xf32>
    %75 = tpu.matmul %73, %74, %cst_40 {dimension_numbers = #tpu.dot_dimension_numbers<[1], [0], [0], [1], [0, 0, 1, 1], [], []>} : vector<8x8xbf16>, vector<8x8xbf16>, vector<8x8xf32> -> vector<8x8xf32>
    %76 = tpu.reciprocal %72 {approx = true} : vector<8x1xf32> -> vector<8x1xf32>
    %77 = vector.broadcast %76 : vector<8x1xf32> to vector<8x8xf32>
    %78 = arith.mulf %75, %77 : vector<8x8xf32>
    %79 = vector.extract_strided_slice %3 {offsets = [0, 8], sizes = [32, 8], strides = [1, 1]} : vector<32x32xbf16> to vector<32x8xbf16>
    %80 = arith.truncf %78 : vector<8x8xf32> to vector<8x8xbf16>
    %cst_41 = arith.constant dense<0.000000e+00> : vector<8x32xf32>
    %81 = tpu.matmul %80, %79, %cst_41 {dimension_numbers = #tpu.dot_dimension_numbers<[1], [1], [0], [0], [0, 0, 1, 0], [], []>} : vector<8x8xbf16>, vector<32x8xbf16>, vector<8x32xf32> -> vector<8x32xf32>
    %82 = arith.addf %57, %81 : vector<8x32xf32>
    %83 = vector.extract_strided_slice %12 {offsets = [0, 16], sizes = [8, 8], strides = [1, 1]} : vector<8x32xf32> to vector<8x8xf32>
    %84 = vector.extract_strided_slice %19 {offsets = [0, 16], sizes = [8, 8], strides = [1, 1]} : vector<8x32xf32> to vector<8x8xf32>
    %85 = vector.extract_strided_slice %26 {offsets = [0, 16], sizes = [8, 8], strides = [1, 1]} : vector<8x32xf32> to vector<8x8xf32>
    %86 = arith.truncf %83 : vector<8x8xf32> to vector<8x8xbf16>
    %87 = arith.truncf %84 : vector<8x8xf32> to vector<8x8xbf16>
    %cst_42 = arith.constant dense<0.000000e+00> : vector<8x8xf32>
    %88 = tpu.matmul %86, %87, %cst_42 {dimension_numbers = #tpu.dot_dimension_numbers<[1], [1], [0], [0], [0, 0, 1, 0], [], []>} : vector<8x8xbf16>, vector<8x8xbf16>, vector<8x8xf32> -> vector<8x8xf32>
    %cst_43 = arith.constant -1.000000e+09 : f32
    %89 = vector.broadcast %cst_43 : f32 to vector<8x8xf32>
    %90 = arith.select %31, %88, %89 : vector<8x8xi1>, vector<8x8xf32>
    %cst_44 = arith.constant dense<0xFF800000> : vector<8xf32>
    %91 = vector.multi_reduction <maximumf>, %90, %cst_44 [1] : vector<8x8xf32> to vector<8xf32>
    %92 = vector.shape_cast %91 : vector<8xf32> to vector<8x1xf32>
    %93 = vector.broadcast %92 : vector<8x1xf32> to vector<8x8xf32>
    %94 = arith.subf %90, %93 : vector<8x8xf32>
    %95 = math.exp %94 : vector<8x8xf32>
    %cst_45 = arith.constant dense<0.000000e+00> : vector<8xf32>
    %96 = vector.multi_reduction <add>, %95, %cst_45 [1] : vector<8x8xf32> to vector<8xf32>
    %97 = vector.shape_cast %96 : vector<8xf32> to vector<8x1xf32>
    %98 = arith.truncf %95 : vector<8x8xf32> to vector<8x8xbf16>
    %99 = arith.truncf %85 : vector<8x8xf32> to vector<8x8xbf16>
    %cst_46 = arith.constant dense<0.000000e+00> : vector<8x8xf32>
    %100 = tpu.matmul %98, %99, %cst_46 {dimension_numbers = #tpu.dot_dimension_numbers<[1], [0], [0], [1], [0, 0, 1, 1], [], []>} : vector<8x8xbf16>, vector<8x8xbf16>, vector<8x8xf32> -> vector<8x8xf32>
    %101 = tpu.reciprocal %97 {approx = true} : vector<8x1xf32> -> vector<8x1xf32>
    %102 = vector.broadcast %101 : vector<8x1xf32> to vector<8x8xf32>
    %103 = arith.mulf %100, %102 : vector<8x8xf32>
    %104 = vector.extract_strided_slice %3 {offsets = [0, 16], sizes = [32, 8], strides = [1, 1]} : vector<32x32xbf16> to vector<32x8xbf16>
    %105 = arith.truncf %103 : vector<8x8xf32> to vector<8x8xbf16>
    %cst_47 = arith.constant dense<0.000000e+00> : vector<8x32xf32>
    %106 = tpu.matmul %105, %104, %cst_47 {dimension_numbers = #tpu.dot_dimension_numbers<[1], [1], [0], [0], [0, 0, 1, 0], [], []>} : vector<8x8xbf16>, vector<32x8xbf16>, vector<8x32xf32> -> vector<8x32xf32>
    %107 = arith.addf %82, %106 : vector<8x32xf32>
    %108 = vector.extract_strided_slice %12 {offsets = [0, 24], sizes = [8, 8], strides = [1, 1]} : vector<8x32xf32> to vector<8x8xf32>
    %109 = vector.extract_strided_slice %19 {offsets = [0, 24], sizes = [8, 8], strides = [1, 1]} : vector<8x32xf32> to vector<8x8xf32>
    %110 = vector.extract_strided_slice %26 {offsets = [0, 24], sizes = [8, 8], strides = [1, 1]} : vector<8x32xf32> to vector<8x8xf32>
    %111 = arith.truncf %108 : vector<8x8xf32> to vector<8x8xbf16>
    %112 = arith.truncf %109 : vector<8x8xf32> to vector<8x8xbf16>
    %cst_48 = arith.constant dense<0.000000e+00> : vector<8x8xf32>
    %113 = tpu.matmul %111, %112, %cst_48 {dimension_numbers = #tpu.dot_dimension_numbers<[1], [1], [0], [0], [0, 0, 1, 0], [], []>} : vector<8x8xbf16>, vector<8x8xbf16>, vector<8x8xf32> -> vector<8x8xf32>
    %cst_49 = arith.constant -1.000000e+09 : f32
    %114 = vector.broadcast %cst_49 : f32 to vector<8x8xf32>
    %115 = arith.select %31, %113, %114 : vector<8x8xi1>, vector<8x8xf32>
    %cst_50 = arith.constant dense<0xFF800000> : vector<8xf32>
    %116 = vector.multi_reduction <maximumf>, %115, %cst_50 [1] : vector<8x8xf32> to vector<8xf32>
    %117 = vector.shape_cast %116 : vector<8xf32> to vector<8x1xf32>
    %118 = vector.broadcast %117 : vector<8x1xf32> to vector<8x8xf32>
    %119 = arith.subf %115, %118 : vector<8x8xf32>
    %120 = math.exp %119 : vector<8x8xf32>
    %cst_51 = arith.constant dense<0.000000e+00> : vector<8xf32>
    %121 = vector.multi_reduction <add>, %120, %cst_51 [1] : vector<8x8xf32> to vector<8xf32>
    %122 = vector.shape_cast %121 : vector<8xf32> to vector<8x1xf32>
    %123 = arith.truncf %120 : vector<8x8xf32> to vector<8x8xbf16>
    %124 = arith.truncf %110 : vector<8x8xf32> to vector<8x8xbf16>
    %cst_52 = arith.constant dense<0.000000e+00> : vector<8x8xf32>
    %125 = tpu.matmul %123, %124, %cst_52 {dimension_numbers = #tpu.dot_dimension_numbers<[1], [0], [0], [1], [0, 0, 1, 1], [], []>} : vector<8x8xbf16>, vector<8x8xbf16>, vector<8x8xf32> -> vector<8x8xf32>
    %126 = tpu.reciprocal %122 {approx = true} : vector<8x1xf32> -> vector<8x1xf32>
    %127 = vector.broadcast %126 : vector<8x1xf32> to vector<8x8xf32>
    %128 = arith.mulf %125, %127 : vector<8x8xf32>
    %129 = vector.extract_strided_slice %3 {offsets = [0, 24], sizes = [32, 8], strides = [1, 1]} : vector<32x32xbf16> to vector<32x8xbf16>
    %130 = arith.truncf %128 : vector<8x8xf32> to vector<8x8xbf16>
    %cst_53 = arith.constant dense<0.000000e+00> : vector<8x32xf32>
    %131 = tpu.matmul %130, %129, %cst_53 {dimension_numbers = #tpu.dot_dimension_numbers<[1], [1], [0], [0], [0, 0, 1, 0], [], []>} : vector<8x8xbf16>, vector<32x8xbf16>, vector<8x32xf32> -> vector<8x32xf32>
    %132 = arith.addf %107, %131 : vector<8x32xf32>
    %c0_54 = arith.constant 0 : index
    %c0_55 = arith.constant 0 : index
    %133 = vector.load %arg12[%c0_54, %c0_55] : memref<1x32xf32, #tpu.memory_space<vmem>>, vector<1x32xf32>
    %134 = vector.broadcast %133 : vector<1x32xf32> to vector<8x32xf32>
    %135 = arith.addf %132, %134 : vector<8x32xf32>
    %c0_56 = arith.constant 0 : index
    %c0_57 = arith.constant 0 : index
    %c0_58 = arith.constant 0 : index
    %136 = vector.load %arg13[%c0_56, %c0_57, %c0_58] : memref<1x8x32xf32, #tpu.memory_space<vmem>>, vector<1x8x32xf32>
    %137 = vector.shape_cast %136 : vector<1x8x32xf32> to vector<8x32xf32>
    %138 = vector.shape_cast %135 : vector<8x32xf32> to vector<1x8x32xf32>
    tpu.vector_store %arg13[%c0_56, %c0_57, %c0_58], %138 {strides = array<i32>} : memref<1x8x32xf32, #tpu.memory_space<vmem>>, vector<1x8x32xf32>,
    return
  }
  func.func @transform_0(%arg0: i32) -> (i32, i32, i32) {
    %c0_i32 = arith.constant 0 : i32
    %c0_i32_0 = arith.constant 0 : i32
    %c0_i32_1 = arith.constant 0 : i32
    return %arg0, %c0_i32, %c0_i32_0 : i32, i32, i32
  }
  func.func @transform_1(%arg0: i32) -> (i32, i32, i32) {
    %c0_i32 = arith.constant 0 : i32
    %c0_i32_0 = arith.constant 0 : i32
    %c0_i32_1 = arith.constant 0 : i32
    return %arg0, %c0_i32, %c0_i32_0 : i32, i32, i32
  }
  func.func @transform_2(%arg0: i32) -> (i32, i32, i32) {
    %c0_i32 = arith.constant 0 : i32
    %c0_i32_0 = arith.constant 0 : i32
    %c0_i32_1 = arith.constant 0 : i32
    return %arg0, %c0_i32, %c0_i32_0 : i32, i32, i32
  }
  func.func @transform_3(%arg0: i32) -> (i32, i32, i32) {
    %c0_i32 = arith.constant 0 : i32
    %c0_i32_0 = arith.constant 0 : i32
    %c0_i32_1 = arith.constant 0 : i32
    return %arg0, %c0_i32, %c0_i32_0 : i32, i32, i32
  }
  func.func @transform_4(%arg0: i32) -> (i32, i32) {
    %c0_i32 = arith.constant 0 : i32
    %c0_i32_0 = arith.constant 0 : i32
    %c0_i32_1 = arith.constant 0 : i32
    return %c0_i32, %c0_i32_0 : i32, i32
  }
  func.func @transform_5(%arg0: i32) -> (i32, i32) {
    %c0_i32 = arith.constant 0 : i32
    %c0_i32_0 = arith.constant 0 : i32
    %c0_i32_1 = arith.constant 0 : i32
    return %c0_i32, %c0_i32_0 : i32, i32
  }
  func.func @transform_6(%arg0: i32) -> (i32, i32) {
    %c0_i32 = arith.constant 0 : i32
    %c0_i32_0 = arith.constant 0 : i32
    %c0_i32_1 = arith.constant 0 : i32
    return %c0_i32, %c0_i32_0 : i32, i32
  }
  func.func @transform_7(%arg0: i32) -> (i32, i32) {
    %c0_i32 = arith.constant 0 : i32
    %c0_i32_0 = arith.constant 0 : i32
    %c0_i32_1 = arith.constant 0 : i32
    return %c0_i32, %c0_i32_0 : i32, i32
  }
  func.func @transform_8(%arg0: i32) -> (i32, i32) {
    %c0_i32 = arith.constant 0 : i32
    %c0_i32_0 = arith.constant 0 : i32
    %c0_i32_1 = arith.constant 0 : i32
    return %c0_i32, %c0_i32_0 : i32, i32
  }
  func.func @transform_9(%arg0: i32) -> (i32, i32) {
    %c0_i32 = arith.constant 0 : i32
    %c0_i32_0 = arith.constant 0 : i32
    %c0_i32_1 = arith.constant 0 : i32
    return %c0_i32, %c0_i32_0 : i32, i32
  }
  func.func @transform_10(%arg0: i32) -> (i32, i32) {
    %c0_i32 = arith.constant 0 : i32
    %c0_i32_0 = arith.constant 0 : i32
    %c0_i32_1 = arith.constant 0 : i32
    return %c0_i32, %c0_i32_0 : i32, i32
  }
  func.func @transform_11(%arg0: i32) -> (i32, i32) {
    %c0_i32 = arith.constant 0 : i32
    %c0_i32_0 = arith.constant 0 : i32
    %c0_i32_1 = arith.constant 0 : i32
    return %c0_i32, %c0_i32_0 : i32, i32
  }
  func.func @transform_12(%arg0: i32) -> (i32, i32, i32) {
    %c0_i32 = arith.constant 0 : i32
    %c0_i32_0 = arith.constant 0 : i32
    %c0_i32_1 = arith.constant 0 : i32
    return %arg0, %c0_i32, %c0_i32_0 : i32, i32, i32
  }
}

</mosaic_0001>

<bundles_post_ra>
// kernel: tpu_custom_call.1
= control target key start
LH: loop header
LB: loop body
LE: loop exit
PB: predicated region body
PF: predicated region fallthrough
CT: control target
= control target key end

     0   :  { %s2897_s0 = inlined_call_operand.hbm [shape: f32[2,8,32], index: 0, kind: input, shape index: {}]   ;;  %s2898_s1 = inlined_call_operand.hbm [shape: f32[2,8,32], index: 1, kind: input, shape index: {}]   ;;  %s2899_s2 = inlined_call_operand.hbm [shape: f32[2,8,32], index: 2, kind: input, shape index: {}]   ;;  %s2900_s3 = inlined_call_operand.hbm [shape: s8[2,8,8], index: 3, kind: input, shape index: {}]   ;;  %s2901_s4 = inlined_call_operand.hbm [shape: bf16[32,32], index: 4, kind: input, shape index: {}]   ;;  %s2902_s5 = inlined_call_operand.vmem [shape: f32[1,32], index: 5, kind: input, shape index: {}]   ;;  %s2903_s6 = inlined_call_operand.vmem [shape: bf16[32,32], index: 6, kind: input, shape index: {}]   ;;  %s2904_s7 = inlined_call_operand.vmem [shape: f32[1,32], index: 7, kind: input, shape index: {}]   ;;  %s2905_s8 = inlined_call_operand.hbm [shape: bf16[32,32], index: 8, kind: input, shape index: {}]   ;;  %s2906_s9 = inlined_call_operand.hbm [shape: f32[1,32], index: 9, kind: input, shape index: {}]   ;;  %s2907_s10 = inlined_call_operand.vmem [shape: bf16[32,32], index: 10, kind: input, shape index: {}]   ;;  %s2908_s11 = inlined_call_operand.vmem [shape: f32[1,32], index: 11, kind: input, shape index: {}]   ;;  %s2909_s12 = inlined_call_operand.hbm [shape: f32[2,8,32], index: 12, kind: output, shape index: {}]  }
   0x1   :  { %2929 = sst [smem:[#allocation27_spill]] %s2898_s1 }
   0x2   :  { %2930 = sst [smem:[#allocation28_spill]] %s2901_s4 }
   0x3   :  { %2931 = sst [smem:[#allocation29_spill]] %s2905_s8 }
   0x4   :  { %2932 = sst [smem:[#allocation30_spill]] %s2907_s10 }
   0x5   :  { %2933 = sst [smem:[#allocation31_spill]] %s2908_s11 }
   0x6   :  { %2934 = sst [smem:[#allocation32_spill]] %s2909_s12 }
   0x7   :  { %17 = vsyncpa [#allocation3], 0 }
   0x8   :  { %19 = vsyncpa [#allocation3 + $0x1], 0 }
   0x9   :  { %20 = vsyncpa [#allocation6], 0 }
   0xa   :  { %22 = vsyncpa [#allocation6 + $0x1], 0 }
   0xb   :  { %23 = vsyncpa [#allocation9], 0 }
   0xc   :  { %25 = vsyncpa [#allocation9 + $0x1], 0 }
   0xd   :  { %26 = vsyncpa [#allocation12], 0 }
   0xe   :  { %27 = vsyncpa [#allocation4], 0 }
   0xf   :  { %29 = vsyncpa [#allocation4 + $0x1], 0  ;;  %s2348_s21 = smov 0   ;;  %s2350_s22 = smov 0  }
  0x10   :  { %s2352_s23 = smov 0   ;;  %s2354_s24 = smov 0  }
  0x11 LB: > { %2935 = sst [smem:[#allocation21_spill]] %s2254_s21  ;;  %s2369_s25 = sadd.s32 4294967295, %s2266_s24   ;;  %s2266_s24 = sphi %s2354_s24, %s2975_s24   ;;  %s2262_s23 = sphi %s2352_s23, %s2977_s23   ;;  %s2258_s22 = sphi %s2350_s22, %s2979_s22   ;;  %s2254_s21 = sphi %s2348_s21, %s2978_s21  }
  0x12   : > { %2936 = sst [smem:[#allocation22_spill]] %s2262_s23  ;;  %s1662_s26 = sadd.s32 4294967294, %s2266_s24  }
  0x13   : > { %p55_p0 = scmp.ne.s32.totalorder %s2258_s22, %s2254_s21  ;;  %p2911_p1 = scmp.eq.s32.totalorder %s2369_s25, 0 }
  0x14   : > { %p331_p3 = scmp.eq.s32.totalorder %s1662_s26, 1  ;;  %p1663_p5 = scmp.ge.s32.totalorder %s2266_s24, 1 }
  0x15   : > { %p2378_p4 = por %p2911_p1, %p55_p0  ;;  %p338_p7 = scmp.lt.s32.totalorder %s2266_s24, 3 }
  0x16   : > { %p2383_p6 = por %p331_p3, %p55_p0  ;;  %s2268_s30 = smov [#allocation10]  }
  0x17   : > { %s2937_s27 = scalar_select %p2378_p4, 1, 0 }
  0x18   : > { %s2938_s28 = scalar_select %p2383_p6, 1, 0 }
  0x19   : > { %p2388_p8 = pnand %p1663_p5, %p338_p7  ;;  %s350_s13 = sshll.u32 %s2268_s30, 4  ;;  %s2392_s13 = int_to_ptr.vmem [resolvable:$true] %s350_s13 }
  0x1a   : > { %2939 = sst [smem:[#allocation23_spill]] %s2938_s28  ;;  %s2269_s15 = smov [#allocation11]  }
  0x1b   : > { %s2940_s29 = scalar_select %p2388_p8, 1, 0 }
  0x1c   : > { %p1879_p9 = pneg %p2388_p8  ;;  %s372_s16 = sshll.u32 %s2269_s15, 4  ;;  %s2403_s16 = int_to_ptr.vmem [resolvable:$true] %s372_s16 }
  0x1d   : > { %s2942_s4 = sld [smem:[#allocation28_spill]] }
  0x1e   : > { %p2399_p11 = pnand %p1879_p9, %p2911_p1 }
  0x20   : > { %s2941_s14 = scalar_select %p2399_p11, 1, 0 }
  0x21   : > { %p2413_p13 = pneg %p2399_p11 }
  0x23   : > { %s1980_s19 = scalar_lea.hbm %s2942_s4, 256 }
  0x24   : > { %p1981_p12 = scmp.ne.s32.totalorder %s2942_s4, %s1980_s19  ;;  %p1987_p5 = scmp.lt.u32.totalorder %s1980_s19, %s2942_s4 }
  0x25   : > { %s2943_s30 = scalar_select %p2413_p13, 1, 0 }
  0x26   : > { %p1983_p0 = pnand %p2413_p13, %p1981_p12 }
  0x28   : > { %p1984_p3 = pneg %p1983_p0 }
  0x2a   : > { %p1989_p7 = pnand %p1987_p5, %p1984_p3 }
  0x2c   : > { %1992 = shalt.err (!%p1989_p7)
}
  0x2d   : > { %s1993_s17 = scalar_lea.vmem %s2392_s13, 256  ;;  %p2001_p2 = scmp.lt.s32.totalorder %s2392_s13, %s2392_s13 }
  0x2e   : > { %p1994_p9 = scmp.ne.s32.totalorder %s2392_s13, %s1993_s17  ;;  %p2002_p6 = scmp.lt.s32.totalorder %s1993_s17, %s1993_s17 }
  0x30   : > { %p1996_p10 = pnand %p1994_p9, %p2413_p13  ;;  %p2003_p12 = por %p2002_p6, %p2001_p2 }
  0x32   : > { %p1997_p1 = pneg %p1996_p10 }
  0x34   : > { %p2004_p0 = pnand %p2003_p12, %p1997_p1 }
  0x36   : > { %2007 = shalt.err (!%p2004_p0)
}
  0x37   : > { %s2270_s18 = smov 64   ;;  %s2271_s28 = smov 4  }
  0x38   : > { %1882 = dma.hbm_to_vmem [thread:$0]  (!%p2399_p11), %s2942_s4, 256, %s2392_s13, [#allocation9], %s2270_s18, %s2270_s18, %s2271_s28  }
  0x39   : > { %s2944_s8 = sld [smem:[#allocation29_spill]] }
  0x3f   : > { %s2008_s21 = scalar_lea.hbm %s2944_s8, 256 }
  0x40   : > { %p2009_p2 = scmp.ne.s32.totalorder %s2944_s8, %s2008_s21  ;;  %p2015_p10 = scmp.lt.u32.totalorder %s2008_s21, %s2944_s8 }
  0x42   : > { %p2011_p1 = pnand %p2009_p2, %p2413_p13 }
  0x44   : > { %p2012_p6 = pneg %p2011_p1 }
  0x46   : > { %p2017_p3 = pnand %p2015_p10, %p2012_p6 }
  0x48   : > { %2020 = shalt.err (!%p2017_p3)
}
  0x49   : > { %s2021_s13 = scalar_lea.vmem %s2403_s16, 256  ;;  %p2029_p12 = scmp.lt.s32.totalorder %s2403_s16, %s2403_s16 }
  0x4a   : > { %p2022_p5 = scmp.ne.s32.totalorder %s2403_s16, %s2021_s13  ;;  %p2030_p0 = scmp.lt.s32.totalorder %s2021_s13, %s2021_s13 }
  0x4c   : > { %p2024_p7 = pnand %p2022_p5, %p2413_p13  ;;  %p2031_p2 = por %p2030_p0, %p2029_p12 }
  0x4e   : > { %p2025_p9 = pneg %p2024_p7 }
  0x50   : > { %p2032_p1 = pnand %p2031_p2, %p2025_p9 }
  0x52   : > { %2035 = shalt.err (!%p2032_p1)
}
  0x53   : > { %1885 = dma.hbm_to_vmem [thread:$0]  (!%p2399_p11), %s2944_s8, 256, %s2403_s16, [#allocation12], %s2270_s18, %s2270_s18, %s2271_s28  }
  0x54   : > { %s2458_s12 = sadd.s32 1, %s2266_s24   ;;  %s42_s21 = sadd.s32 1, %s2262_s23 }
  0x55   : > { %2945 = sst [smem:[#allocation24_spill]] %s2458_s12  ;;  %s39_s19 = ssub.s32 %s2266_s24, %s2458_s12 }
  0x56   : > { %p49_p6 = scmp.ne.s32.totalorder %s2262_s23, %s2258_s22  ;;  %p40_p10 = scmp.eq.s32.totalorder %s39_s19, 0 }
  0x57   : > { %p50_p3 = scmp.eq.s32.totalorder %s2266_s24, 0  ;;  %p2946_p5 = scmp.eq.s32.totalorder %s2369_s25, 1 }
  0x58   : > { %p1909_p9 = scmp.lt.s32.totalorder %s2266_s24, 2  ;;  %s2477_s15 = sand.u32 1, %s2262_s23  }
  0x59   : > { %p2468_p7 = por %p2946_p5, %p49_p6  ;;  %p51_p12 = por %p50_p3, %p49_p6 }
  0x5a   : > { %s2474_s26 = scalar_select %p40_p10, %s2262_s23, %s42_s21  }
  0x5b   : > { %s2947_s20 = scalar_select %p2468_p7, 1, 0 }
  0x5c   : > { %2949 = sst [smem:[#allocation26_spill]] %s2474_s26  ;;  %s2480_s16 = sshll.u32 %s2477_s15, 3 }
  0x5d   : > { %2948 = sst [smem:[#allocation25_spill]] %s2947_s20  ;;  %s2483_s18 = sshll.u32 %s2266_s24, 7 }
  0x5e   : > { %p2485_p0 = pnand %p1909_p9, %p51_p12  ;;  %s2920_s17 = sand.u32 1, %s2266_s24  }
  0x5f   : > { %s2951_s1 = sld [smem:[#allocation27_spill]]  ;;  %s425_s21 = scalar_lea.vmem [#allocation5], %s2480_s16 }
  0x60   : > { %s2950_s28 = scalar_select %p2485_p0, 1, 0 }
  0x61   : > { %s432_s19 = sshll.u32 %s425_s21, 4  ;;  %s2501_s4 = scalar_lea.sflag [#allocation6], %s2920_s17  ;;  %s2497_s19 = int_to_ptr.vmem [resolvable:$true] %s432_s19 }
  0x62   : > { %p2507_p1 = pneg %p2485_p0 }
  0x65   : > { %s2494_s11 = scalar_lea.hbm %s2951_s1, %s2483_s18  ;;  %s2041_s21 = scalar_lea.hbm %s2951_s1, 256 }
  0x66   : > { %s2036_s8 = scalar_lea.hbm %s2494_s11, 128  ;;  %p2042_p3 = scmp.lt.u32.totalorder %s2494_s11, %s2951_s1 }
  0x67   : > { %p2037_p2 = scmp.ne.s32.totalorder %s2494_s11, %s2036_s8  ;;  %p2043_p5 = scmp.lt.u32.totalorder %s2041_s21, %s2036_s8 }
  0x68   : > { %p2045_p12 = scmp.lt.u32.totalorder %s2036_s8, %s2494_s11 }
  0x69   : > { %p2039_p6 = pnand %p2507_p1, %p2037_p2  ;;  %p2044_p9 = por %p2043_p5, %p2042_p3 }
  0x6b   : > { %p2040_p10 = pneg %p2039_p6  ;;  %p2046_p7 = por %p2045_p12, %p2044_p9 }
  0x6d   : > { %p2047_p4 = pnand %p2046_p7, %p2040_p10 }
  0x6f   : > { %2050 = shalt.err (!%p2047_p4)
}
  0x70   : > { %s2051_s17 = scalar_lea.vmem %s2497_s19, 128  ;;  %s2272_s13 = smov [#allocation5]  }
  0x71   : > { %p2052_p2 = scmp.ne.s32.totalorder %s2497_s19, %s2051_s17  ;;  %s2056_s10 = sshll.u32 %s2272_s13, 4  ;;  %s2057_s10 = int_to_ptr.vmem [resolvable:$false] %s2056_s10 }
  0x72   : > { %s2058_s23 = scalar_lea.vmem %s2057_s10, 256  ;;  %p2059_p11 = scmp.lt.s32.totalorder %s2497_s19, %s2057_s10 }
  0x73   : > { %p2054_p6 = pnand %p2052_p2, %p2507_p1  ;;  %p2060_p13 = scmp.lt.s32.totalorder %s2058_s23, %s2051_s17 }
  0x75   : > { %p2055_p8 = pneg %p2054_p6  ;;  %p2061_p3 = por %p2060_p13, %p2059_p11 }
  0x77   : > { %p2062_p5 = pnand %p2061_p3, %p2055_p8 }
  0x79   : > { %2065 = shalt.err (!%p2062_p5)
}
  0x7a   : > { %1895 = dma.hbm_to_vmem [thread:$0]  (!%p2485_p0), %s2494_s11, 128, %s2497_s19, %s2501_s4  }
  0x7b   : > { %s2273_s8 = smov [#allocation13]   ;;  %s2066_s13 = scalar_lea.hbm %s2906_s9, 16 }
  0x7c   : > { %s386_s12 = sshll.u32 %s2273_s8, 4  ;;  %p2067_p4 = scmp.ne.s32.totalorder %s2906_s9, %s2066_s13  ;;  %s387_s12 = int_to_ptr.vmem [resolvable:$true] %s386_s12 }
  0x7d   : > { %p2953_p8 = scmp.ne.s32.totalorder %s2943_s30, 0  ;;  %p2073_p7 = scmp.lt.u32.totalorder %s2066_s13, %s2906_s9 }
  0x7f   : > { %p2069_p11 = pnand %p2067_p4, %p2953_p8 }
  0x81   : > { %p2070_p13 = pneg %p2069_p11 }
  0x83   : > { %p2075_p10 = pnand %p2073_p7, %p2070_p13 }
  0x85   : > { %2078 = shalt.err (!%p2075_p10)
}
  0x86   : > { %s2079_s11 = scalar_lea.vmem %s387_s12, 16  ;;  %s2086_s1 = scalar_lea.vmem %s387_s12, 32 }
  0x87   : > { %p2080_p9 = scmp.ne.s32.totalorder %s387_s12, %s2079_s11  ;;  %p2087_p6 = scmp.lt.s32.totalorder %s387_s12, %s387_s12 }
  0x88   : > { %p2088_p3 = scmp.lt.s32.totalorder %s2086_s1, %s2079_s11 }
  0x89   : > { %p2082_p12 = pnand %p2080_p9, %p2953_p8 }
  0x8a   : > { %p2089_p5 = por %p2088_p3, %p2087_p6 }
  0x8b   : > { %p2083_p2 = pneg %p2082_p12 }
  0x8d   : > { %p2090_p0 = pnand %p2089_p5, %p2083_p2 }
  0x8f   : > { %2093 = shalt.err (!%p2090_p0)
}
  0x90   : > { %p2954_p4 = scmp.ne.s32.totalorder %s2941_s14, 0  ;;  %s2553_s21 = scalar_lea.hbm %s2897_s0, %s2483_s18 }
  0x91   : > { %s407_s13 = scalar_lea.vmem [#allocation2], %s2480_s16  ;;  %s404_s14 = scalar_lea.sflag [#allocation3], %s2477_s15 }
  0x92   : > { %1888 = dma.hbm_to_vmem [thread:$0]  (!%p2954_p4), %s2906_s9, 16, %s387_s12, [#allocation12]  }
  0x93   : > { %s414_s10 = sshll.u32 %s407_s13, 4  ;;  %s2094_s17 = scalar_lea.hbm %s2553_s21, 128  ;;  %s415_s10 = int_to_ptr.vmem [resolvable:$true] %s414_s10 }
  0x94   : > { %p2095_p0 = scmp.ne.s32.totalorder %s2553_s21, %s2094_s17  ;;  %s2099_s11 = scalar_lea.hbm %s2897_s0, 256 }
  0x95   : > { %p2100_p13 = scmp.lt.u32.totalorder %s2553_s21, %s2897_s0  ;;  %p2101_p7 = scmp.lt.u32.totalorder %s2099_s11, %s2094_s17 }
  0x96   : > { %p2097_p8 = pnand %p2095_p0, %p2507_p1  ;;  %p2103_p9 = scmp.lt.u32.totalorder %s2094_s17, %s2553_s21 }
  0x97   : > { %p2102_p10 = por %p2101_p7, %p2100_p13 }
  0x98   : > { %p2098_p11 = pneg %p2097_p8 }
  0x99   : > { %p2104_p12 = por %p2103_p9, %p2102_p10 }
  0x9b   : > { %p2105_p2 = pnand %p2104_p12, %p2098_p11 }
  0x9d   : > { %2108 = shalt.err (!%p2105_p2)
}
  0x9e   : > { %s2109_s19 = scalar_lea.vmem %s415_s10, 128  ;;  %s2274_s8 = smov [#allocation2]  }
  0x9f   : > { %p2110_p6 = scmp.ne.s32.totalorder %s415_s10, %s2109_s19  ;;  %s2114_s30 = sshll.u32 %s2274_s8, 4  ;;  %s2115_s30 = int_to_ptr.vmem [resolvable:$false] %s2114_s30 }
  0xa0   : > { %s2116_s13 = scalar_lea.vmem %s2115_s30, 256  ;;  %p2117_p4 = scmp.lt.s32.totalorder %s415_s10, %s2115_s30 }
  0xa1   : > { %p2112_p3 = pnand %p2110_p6, %p2507_p1  ;;  %p2118_p0 = scmp.lt.s32.totalorder %s2116_s13, %s2109_s19 }
  0xa3   : > { %p2113_p5 = pneg %p2112_p3  ;;  %p2119_p8 = por %p2118_p0, %p2117_p4 }
  0xa5   : > { %p2120_p7 = pnand %p2119_p8, %p2113_p5 }
  0xa7   : > { %2123 = shalt.err (!%p2120_p7)
}
  0xa8   : > { %p2955_p13 = scmp.ne.s32.totalorder %s2950_s28, 0  ;;  %s2578_s12 = scalar_lea.hbm %s2899_s2, %s2483_s18 }
  0xa9   : > { %s443_s11 = scalar_lea.vmem [#allocation7], %s2480_s16  ;;  %s1674_s20 = sshll.u32 %s2477_s15, 1 }
  0xaa   : > { %1892 = dma.hbm_to_vmem [thread:$0]  (!%p2955_p13), %s2553_s21, 128, %s415_s10, %s404_s14  }
  0xab   : > { %s450_s1 = sshll.u32 %s443_s11, 4  ;;  %s2124_s19 = scalar_lea.hbm %s2578_s12, 128  ;;  %s451_s1 = int_to_ptr.vmem [resolvable:$true] %s450_s1 }
  0xac   : > { %p2125_p11 = scmp.ne.s32.totalorder %s2578_s12, %s2124_s19  ;;  %s2129_s10 = scalar_lea.hbm %s2899_s2, 256 }
  0xad   : > { %p2130_p12 = scmp.lt.u32.totalorder %s2578_s12, %s2899_s2  ;;  %p2131_p2 = scmp.lt.u32.totalorder %s2129_s10, %s2124_s19 }
  0xae   : > { %p2127_p10 = pnand %p2125_p11, %p2507_p1  ;;  %p2133_p3 = scmp.lt.u32.totalorder %s2124_s19, %s2578_s12 }
  0xaf   : > { %p2132_p6 = por %p2131_p2, %p2130_p12 }
  0xb0   : > { %p2128_p9 = pneg %p2127_p10 }
  0xb1   : > { %p2134_p5 = por %p2133_p3, %p2132_p6 }
  0xb3   : > { %p2135_p4 = pnand %p2134_p5, %p2128_p9 }
  0xb5   : > { %2138 = shalt.err (!%p2135_p4)
}
  0xb6   : > { %s2139_s16 = scalar_lea.vmem %s451_s1, 128  ;;  %s2275_s30 = smov [#allocation7]  }
  0xb7   : > { %p2140_p0 = scmp.ne.s32.totalorder %s451_s1, %s2139_s16  ;;  %s2144_s13 = sshll.u32 %s2275_s30, 4  ;;  %s2145_s13 = int_to_ptr.vmem [resolvable:$false] %s2144_s13 }
  0xb8   : > { %s2146_s17 = scalar_lea.vmem %s2145_s13, 256  ;;  %p2147_p11 = scmp.lt.s32.totalorder %s451_s1, %s2145_s13 }
  0xb9   : > { %p2142_p8 = pnand %p2140_p0, %p2507_p1  ;;  %p2148_p10 = scmp.lt.s32.totalorder %s2146_s17, %s2139_s16 }
  0xbb   : > { %p2143_p7 = pneg %p2142_p8  ;;  %p2149_p13 = por %p2148_p10, %p2147_p11 }
  0xbd   : > { %p2150_p2 = pnand %p2149_p13, %p2143_p7 }
  0xbf   : > { %2153 = shalt.err (!%p2150_p2)
}
  0xc0   : > { %p2956_p12 = scmp.ne.s32.totalorder %s2950_s28, 0  ;;  %s1675_s23 = sshll.u32 %s2266_s24, 5 }
  0xc1   : > { %s2604_s8 = scalar_lea.hbm %s2900_s3, %s1675_s23  ;;  %s461_s21 = scalar_lea.vmem [#allocation8], %s1674_s20 }
  0xc2   : > { %1898 = dma.hbm_to_vmem [thread:$0]  (!%p2956_p12), %s2578_s12, 128, %s451_s1, %s2501_s4  }
  0xc3   : > { %s468_s10 = sshll.u32 %s461_s21, 4  ;;  %s2957_s14 = sand.u32 1, %s2266_s24   ;;  %s469_s10 = int_to_ptr.vmem [resolvable:$true] %s468_s10 }
  0xc4   : > { %s458_s18 = scalar_lea.sflag [#allocation9], %s2957_s14  ;;  %s2154_s16 = scalar_lea.hbm %s2604_s8, 32 }
  0xc5   : > { %p2155_p13 = scmp.ne.s32.totalorder %s2604_s8, %s2154_s16  ;;  %s2159_s1 = scalar_lea.hbm %s2900_s3, 64 }
  0xc6   : > { %p2160_p3 = scmp.lt.u32.totalorder %s2604_s8, %s2900_s3  ;;  %p2161_p5 = scmp.lt.u32.totalorder %s2159_s1, %s2154_s16 }
  0xc7   : > { %p2157_p9 = pnand %p2155_p13, %p2507_p1  ;;  %p2163_p0 = scmp.lt.u32.totalorder %s2154_s16, %s2604_s8 }
  0xc8   : > { %p2162_p4 = por %p2161_p5, %p2160_p3 }
  0xc9   : > { %p2158_p6 = pneg %p2157_p9 }
  0xca   : > { %p2164_p8 = por %p2163_p0, %p2162_p4 }
  0xcc   : > { %p2165_p7 = pnand %p2164_p8, %p2158_p6 }
  0xce   : > { %2168 = shalt.err (!%p2165_p7)
}
  0xcf   : > { %s2169_s20 = scalar_lea.vmem %s469_s10, 32  ;;  %s2276_s13 = smov [#allocation8]  }
  0xd0   : > { %p2170_p11 = scmp.ne.s32.totalorder %s469_s10, %s2169_s20  ;;  %s2174_s17 = sshll.u32 %s2276_s13, 4  ;;  %s2175_s17 = int_to_ptr.vmem [resolvable:$false] %s2174_s17 }
  0xd1   : > { %s2176_s23 = scalar_lea.vmem %s2175_s17, 64  ;;  %p2177_p13 = scmp.lt.s32.totalorder %s469_s10, %s2175_s17 }
  0xd2   : > { %p2172_p10 = pnand %p2170_p11, %p2507_p1  ;;  %p2178_p9 = scmp.lt.s32.totalorder %s2176_s23, %s2169_s20 }
  0xd4   : > { %p2173_p2 = pneg %p2172_p10  ;;  %p2179_p12 = por %p2178_p9, %p2177_p13 }
  0xd6   : > { %p2180_p3 = pnand %p2179_p12, %p2173_p2 }
  0xd8   : > { %2183 = shalt.err (!%p2180_p3)
}
  0xd9   : > { %p2958_p5 = scmp.ne.s32.totalorder %s2950_s28, 0  ;;  %p2959_p6 = scmp.ne.s32.totalorder %s2940_s29, 0 }
  0xda   : > { %s2630_s26 = sand.u32 (!%p2959_p6), 1, %s2258_s22   ;;  %p2960_p1 = scmp.ne.s32.totalorder (!%p2959_p6), %s2937_s27, 0 }
  0xdb   : > { %1901 = dma.hbm_to_vmem [thread:$0]  (!%p2958_p5), %s2604_s8, 32, %s469_s10, %s458_s18  }
  0xdc   : > { %477 = sbr.rel (%p2959_p6) target bundleno = 2661 (0xa65), region = 68  ;;  %s2633_s11 = sshll.u32 (!%p2959_p6), %s2630_s26, 3 }
  0xdd   : > { %s480_s19 = scalar_lea.sflag (!%p2959_p6), [#allocation3], %s2630_s26  ;;  %s483_s21 = scalar_lea.vmem (!%p2959_p6), [#allocation2], %s2633_s11 }
  0xe3   : > { %2229 = dma.done.wait (%p2960_p1), %s480_s19, 128  }
  0xe4   : > { %2231 = vsyncadd (%p2960_p1), %s480_s19, 4294967168  ;;  %s488_s29 = sand.u32 1, %s2369_s25   ;;  %s492_s8 = scalar_lea.vmem [#allocation5], %s2633_s11 }
  0xe5   : > { %s489_s28 = scalar_lea.sflag [#allocation6], %s488_s29 }
  0xe6   : > { %2233 = dma.done.wait (%p2960_p1), %s489_s28, 256  }
  0xe7   : > { %2235 = vsyncadd (%p2960_p1), %s489_s28, 4294967040  ;;  %s1680_s10 = sshll.u32 %s2630_s26, 1  ;;  %s501_s14 = scalar_lea.vmem [#allocation7], %s2633_s11 }
  0xe8   : > { %s507_s18 = scalar_lea.sflag [#allocation9], %s488_s29  ;;  %s2649_s16 = scalar_lea.vmem [#allocation8], %s1680_s10 }
  0xe9   : > { %2237 = dma.done.wait (%p2960_p1), %s507_s18, 32  }
  0xea   : > { %2239 = vsyncadd (%p2960_p1), %s507_s18, 4294967264  ;;  %p2961_p12 = scmp.eq.s32.totalorder %s2369_s25, 0 }
  0xec   : > { %2241 = dma.done.wait (%p2961_p12), [#allocation9], 256   ;;  %p2962_p4 = pmov %p2961_p12 }
  0xee   : > { %2243 = vsyncadd (%p2962_p4), [#allocation9], 4294967040  ;;  %p2963_p0 = pmov %p2962_p4 }
  0xf0   : > { %2245 = dma.done.wait (%p2963_p0), [#allocation12], 272   ;;  %p2964_p8 = pmov %p2963_p0 }
  0xf1   : > { %v2277_v0 = vmov 0.0   ;;  %vm2278_vm0 = vmmov 0   ;;  %vm614_vm1 = vcmask 261120   ;;  %v1956_v1 = vld [vmem:[%s2903_s6] sm:$0xff]   ;;  %v1957_v2 = vld [vmem:[#allocation10] sm:$0xff]   ;;  %v1958_v5 = vld [vmem:[%s2903_s6 + $0x8] sm:$0xff]  }
  0xf2   : > { %2247 = vsyncadd (%p2964_p8), [#allocation12], 4294967024  ;;  %1761 = vmatprep.subr.bf16.mxu1 %v2277_v0  ;;  %1753 = vmatprep.subr.bf16.mxu0 %v2277_v0  ;;  %v688_v3 = vsel %vm614_vm1, %v1956_v1, 0  ;;  %v619_v4 = vsel %vm614_vm1, %v1957_v2, 0  ;;  %v1959_v6 = vld [vmem:[#allocation10 + $0x8] sm:$0xff]   ;;  %v691_v7 = vsel %vm614_vm1, %v1958_v5, 0 }
  0xf3   : > { %1765 = vmatprep.mubr.msk.bf16.mxu1 %vm2278_vm0, %v2277_v0  ;;  %1757 = vmatprep.mubr.msk.bf16.mxu0 %vm2278_vm0, %v2277_v0  ;;  %v622_v8 = vsel %vm614_vm1, %v1959_v6, 0  ;;  %v665_v9 = vld [vmem:[%s492_s8] sm:$0xff]  ;;  %v595_v10 = vld [vmem:[%s483_s21] sm:$0xff]  ;;  %vm807_vm2 = vcmask 64512   ;;  %s2279_s17 = smov 120   ;;  %vm869_vm4 = vcmask 1043456  }
  0xf4   : > { %1762 = vmatpush3.bf16.xpose.msra.mxu1 %v688_v3  ;;  %1754 = vmatpush3.bf16.xpose.msra.mxu0 %v619_v4  ;;  %v666_v11 = vpack.c.bf16 %v665_v9, %v665_v9  ;;  %v596_v12 = vpack.c.bf16 %v595_v10, %v595_v10  ;;  %v1960_v13 = vld [vmem:[#allocation11] sm:$0xff]   ;;  %v1689_v15 = vld [vmem:[%s2904_s7] ss:$0 sm:$0xff]  ;;  %v1961_v16 = vld [vmem:[#allocation11 + $0x8] sm:$0xff]   ;;  %s2965_s21 = sld [smem:[#allocation30_spill]]  ;;  %s2280_s10 = smov 112  }
  0xf5   : > { %1763 = vmatprep.subr.bf16.mxu1 %v2277_v0  ;;  %1755 = vmatprep.subr.bf16.mxu0 %v2277_v0  ;;  %v756_v14 = vsel %vm614_vm1, %v1960_v13, 0  ;;  %v1685_v17 = vld [vmem:[%s2902_s5] ss:$0 sm:$0xff]  ;;  %v759_v25 = vsel %vm614_vm1, %v1961_v16, 0  ;;  %v801_v35 = vld [vmem:[%s2649_s16] sm:$0x3] }
  0xf6   : > { %v733_v32 = vld [vmem:[%s501_s14] sm:$0xff]  ;;  %v802_v36 = vunpack.c.0.s8 %v801_v35  ;;  %v1693_v46 = vld [vmem:[#allocation13] ss:$0 sm:$0xff]  ;;  %s2281_s14 = smov 104   ;;  %s2967_s27 = sld [smem:[#allocation31_spill]] }
  0xf7   : > { %v734_v34 = vpack.c.bf16 %v733_v32, %v733_v32  ;;  %s2968_s4 = sld [smem:[#allocation25_spill]]  ;;  %s1713_s12 = sshll.u32 %s2369_s25, 7 }
  0xf8   : > { %v2722_v37 = vcvt.s32.f32 %v802_v36  ;;  %s577_s1 = scalar_lea.vmem [#allocation14], %s2633_s11  ;;  %s2969_s13 = sld [smem:[#allocation32_spill]] }
  0xf9   : > { %s1498_s30 = sshll.u32 %s577_s1, 4  ;;  %s1485_s25 = scalar_lea.sflag [#allocation4], %s2630_s26  ;;  %s2854_s30 = int_to_ptr.vmem [resolvable:$true] %s1498_s30 }
  0xfa   : > { %vm804_vm3 = vcmp.ne.f32.partialorder %v2722_v37, 0.0  ;;  %s2966_s29 = smov %s2965_s21  ;;  %v2753_v9 = vld [vmem:[%s2965_s21] sm:$0xff]   ;;  %s2184_s11 = scalar_lea.vmem %s2854_s30, 128 }
  0xfb   : > { %v2760_v10 = vld [vmem:[%s2966_s29 + $0x8] sm:$0xff]   ;;  %p2185_p7 = scmp.ne.s32.totalorder %s2854_s30, %s2184_s11  ;;  %s2282_s23 = smov [#allocation14]  }
  0xfc   : > { %1764 = vmatpush3.bf16.xpose.msra.mxu1 %v691_v7  ;;  %1756 = vmatpush3.bf16.xpose.msra.mxu0 %v622_v8  ;;  %s2188_s19 = sshll.u32 %s2282_s23, 4  ;;  %s2189_s19 = int_to_ptr.vmem [resolvable:$false] %s2188_s19 }
  0xfd   : > { %1777 = vmatprep.subr.bf16.mxu1 %v2277_v0  ;;  %1769 = vmatprep.subr.bf16.mxu0 %v2277_v0  ;;  %p2970_p11 = scmp.ne.s32.totalorder %s2968_s4, 0  ;;  %s2190_s21 = scalar_lea.vmem %s2189_s19, 256 }
  0xfe   : > { %p2191_p13 = scmp.lt.s32.totalorder %s2854_s30, %s2189_s19  ;;  %p2192_p9 = scmp.lt.s32.totalorder %s2190_s21, %s2184_s11 }
  0xff   : > { %p2186_p10 = pnand %p2185_p7, %p2970_p11 }
 0x100   : > { %p2193_p3 = por %p2192_p9, %p2191_p13 }
 0x101   : > { %p2187_p2 = pneg %p2186_p10 }
 0x103   : > { %1766 = vmatmul.mubr.msk.bf16.vlgmr.msra.gmra.mrb[0].mxu1 %vm614_vm1, %v666_v11  ;;  %1758 = vmatmul.mubr.msk.bf16.vlgmr.msra.gmra.mrb[0].mxu0 %vm614_vm1, %v596_v12  ;;  %p2194_p5 = pnand %p2193_p3, %p2187_p2 }
 0x104   : > { %1779 = vmatprep.mubr.msk.bf16.mxu1 %vm2278_vm0, %v2277_v0  ;;  %1773 = vmatprep.mubr.msk.bf16.mxu0 %vm2278_vm0, %v2277_v0 }
 0x105   : > { %1770 = vmatpush3.bf16.xpose.msra.mxu0 %v756_v14 }
 0x106   : > { %1771 = vmatprep.subr.bf16.mxu0 %v2277_v0 }
 0x10d   : > { %1772 = vmatpush3.bf16.xpose.msra.mxu0 %v759_v25 }
 0x10e   : > { %1801 = vmatprep.subr.bf16.mxu0 %v2277_v0 }
 0x114   : > { %1774 = vmatmul.mubr.msk.bf16.vlgmr.msra.gmra.mrb[4].mxu0 %vm614_vm1, %v734_v34 }
 0x115   : > { %1805 = vmatprep.mubr.msk.bf16.mxu0 %vm2278_vm0, %v2277_v0 }
 0x1d6   : > { %v727_v18 = vpop.f32.mrb[0].mxu1  ;;  %v658_v21 = vpop.f32.mrb[0].mxu0 }
 0x1d7   : > { %v728_v19 = vadd.f32 %v1689_v15, %v727_v18  ;;  %v1767_v20 = vpop.f32.mrb[1].mxu1  ;;  %v659_v23 = vadd.f32 %v1685_v17, %v658_v21  ;;  %v1759_v24 = vpop.f32.mrb[1].mxu0 }
 0x1d8   : > { %v730_v22 = vpop.f32.mrb[2].mxu1  ;;  %v661_v28 = vpop.f32.mrb[2].mxu0 }
 0x1d9   : > { %v2702_v26 = vpack.c.bf16 %v728_v19, %v728_v19  ;;  %v1768_v27 = vpop.f32.mrb[3].mxu1  ;;  %v664_v29 = vmul.f32 0.35355338, %v659_v23  ;;  %v1760_v30 = vpop.f32.mrb[3].mxu0  ;;  %v1098_v22 = vsel %vm807_vm2, %v2753_v9, 0  ;;  %v1101_v23 = vsel %vm807_vm2, %v2760_v10, 0 }
 0x1db   : > { %v812_v31 = vsel %vm807_vm2, %v2702_v26, 0  ;;  %v2708_v33 = vpack.c.bf16 %v664_v29, %v664_v29 }
 0x1dc   : > { %1778 = vmatpush3.bf16.xpose.msra.mxu1 %v812_v31 }
 0x1dd   : > { %1783 = vmatprep.subr.bf16.mxu1 %v2277_v0  ;;  %917 = vrot.lane.b32.xlu1 %v2708_v33, %s2279_s17 }
 0x1e3   : > { %1780 = vmatmul.mubr.msk.bf16.vlgmr.msra.gmra.mrb[4].mxu1 %vm807_vm2, %v2708_v33 }
 0x1e4   : > { %1785 = vmatprep.mubr.msk.bf16.mxu1 %vm2278_vm0, %v2277_v0 }
 0x1e7   : > { %v795_v44 = vpop.f32.mrb[4].mxu0 }
 0x1e8   : > { %v1775_v45 = vpop.f32.mrb[5].mxu0  ;;  %v796_v48 = vadd.f32 %v1693_v46, %v795_v44 }
 0x1e9   : > { %v798_v47 = vpop.f32.mrb[6].mxu0 }
 0x1ea   : > { %v1776_v49 = vpop.f32.mrb[7].mxu0  ;;  %v2728_v50 = vpack.c.bf16 %v796_v48, %v796_v48 }
 0x1ec   : > { %v871_v51 = vsel %vm869_vm4, %v2728_v50, 0 }
 0x1ed   : > { %1784 = vmatpush3.bf16.msra.mxu1 %v871_v51 }
 0x1ee   : > { %1789 = vmatprep.subr.bf16.mxu1 %v2277_v0 }
 0x24f   : > { %v918_v61 = vpop.permute.xlu1 %917 }
 0x2b6   : > { %v848_v38 = vpop.f32.mrb[4].mxu1 }
 0x2b7   : > { %v854_v39 = vsel %vm804_vm3, %v848_v38, -1e+09  ;;  %v1781_v40 = vpop.f32.mrb[5].mxu1 }
 0x2b8   : > { %v851_v41 = vpop.f32.mrb[6].mxu1  ;;  %v855_v42 = vsel %vm807_vm2, %v854_v39, -inf }
 0x2b9   : > { %856 = vmax.xlane.f32.xlu0 %v855_v42  ;;  %v1782_v43 = vpop.f32.mrb[7].mxu1 }
 0x2cf   : > { %920 = vrot.lane.b32.xlu0 %v2702_v26, %s2279_s17 }
 0x2d3   : > { %980 = vrot.lane.b32.xlu0 %v2728_v50, %s2279_s17 }
 0x346   : > { %v857_v52 = vpop.xlane.xlu0 %856 }
 0x347   : > { %v858_v53 = vsub.f32 %v854_v39, %v857_v52 }
 0x349   : > { %v859_v54 = vmul.f32 1.442695, %v858_v53 }
 0x34a   : > { %v921_v56 = vpop.permute.xlu0 %920 }
 0x34b   : > { %1964 = vpow2.f32 %v859_v54  ;;  %v926_v58 = vsel %vm807_vm2, %v921_v56, 0 }
 0x34e   : > { %v981_v59 = vpop.permute.xlu0 %980 }
 0x34f   : > { %v986_v60 = vsel %vm869_vm4, %v981_v59, 0 }
 0x355   : > { %v1965_v55 = vpop.eup %1964 }
 0x356   : > { %v864_v57 = vpack.c.bf16 %v1965_v55, %v1965_v55  ;;  %v861_v11 = vsel %vm807_vm2, %v1965_v55, 0.0 }
 0x358   : > { %1786 = vmatmul.mubr.msk.bf16.vlgmr.msra.gmra.mrb[8].mxu1 %vm807_vm2, %v864_v57 }
 0x359   : > { %1790 = vmatpush3.bf16.xpose.msra.mxu1 %v926_v58  ;;  %1791 = vmatprep.mubr.msk.bf16.mxu1 %vm2278_vm0, %v2277_v0 }
 0x35a   : > { %1795 = vmatprep.subr.bf16.mxu1 %v2277_v0 }
 0x360   : > { %1792 = vmatmul.mubr.msk.bf16.vlgmr.msra.gmra.mrb[12].mxu1 %vm807_vm2, %v918_v61 }
 0x361   : > { %1796 = vmatpush3.bf16.msra.mxu1 %v986_v60  ;;  %1797 = vmatprep.mubr.msk.bf16.mxu1 %vm2278_vm0, %v2277_v0 }
 0x362   : > { %1809 = vmatprep.subr.bf16.mxu1 %v2277_v0 }
 0x42b   : > { %v907_v62 = vpop.f32.mrb[8].mxu1 }
 0x42c   : > { %v1787_v63 = vpop.f32.mrb[9].mxu1 }
 0x42d   : > { %v910_v1 = vpop.f32.mrb[10].mxu1 }
 0x42e   : > { %v1788_v2 = vpop.f32.mrb[11].mxu1 }
 0x433   : > { %v962_v3 = vpop.f32.mrb[12].mxu1 }
 0x434   : > { %v968_v4 = vsel %vm804_vm3, %v962_v3, -1e+09  ;;  %v1793_v5 = vpop.f32.mrb[13].mxu1 }
 0x435   : > { %v965_v6 = vpop.f32.mrb[14].mxu1  ;;  %v969_v7 = vsel %vm807_vm2, %v968_v4, -inf }
 0x436   : > { %970 = vmax.xlane.f32.xlu1 %v969_v7  ;;  %v1794_v8 = vpop.f32.mrb[15].mxu1 }
 0x447   : > { %1041 = vrot.lane.b32.xlu1 %v2753_v9, %s2279_s17 }
 0x44b   : > { %1043 = vrot.lane.b32.xlu1 %v2760_v10, %s2279_s17  ;;  %s2852_s17 = scalar_lea.hbm %s2969_s13, %s1713_s12 }
 0x44f   : > { %1143 = vrot.lane.b32.xlu1 %v2708_v33, %s2280_s10 }
 0x473   : > { %862 = vadd.xlane.f32.xlu1 %v861_v11 }
 0x484   : > { %1204 = vrot.lane.b32.xlu1 %v2728_v50, %s2280_s10 }
 0x488   : > { %1309 = vrot.lane.b32.xlu1 %v2708_v33, %s2281_s14 }
 0x4c3   : > { %v971_v12 = vpop.xlane.xlu1 %970 }
 0x4c4   : > { %v972_v13 = vsub.f32 %v968_v4, %v971_v12 }
 0x4c6   : > { %v973_v14 = vmul.f32 1.442695, %v972_v13 }
 0x4c7   : > { %v1042_v15 = vpop.permute.xlu1 %1041 }
 0x4c8   : > { %1966 = vpow2.f32 %v973_v14  ;;  %v1049_v16 = vsel %vm807_vm2, %v1042_v15, 0 }
 0x4c9   : > { %1802 = vmatpush3.bf16.xpose.msra.mxu0 %v1049_v16 }
 0x4ca   : > { %1803 = vmatprep.subr.bf16.mxu0 %v2277_v0 }
 0x4cb   : > { %v1044_v17 = vpop.permute.xlu1 %1043 }
 0x4cc   : > { %v1052_v18 = vsel %vm807_vm2, %v1044_v17, 0 }
 0x4cf   : > { %v1144_v24 = vpop.permute.xlu1 %1143 }
 0x4d1   : > { %1804 = vmatpush3.bf16.xpose.msra.mxu0 %v1052_v18 }
 0x4d2   : > { %v1967_v19 = vpop.eup %1966  ;;  %1817 = vmatprep.subr.bf16.mxu0 %v2277_v0 }
 0x4d3   : > { %v975_v20 = vsel %vm807_vm2, %v1967_v19, 0.0  ;;  %v978_v21 = vpack.c.bf16 %v1967_v19, %v1967_v19 }
 0x4d4   : > { %976 = vadd.xlane.f32.xlu0 %v975_v20 }
 0x4d5   : > { %1798 = vmatmul.mubr.msk.bf16.vlgmr.msra.gmra.mrb[16].mxu1 %vm807_vm2, %v978_v21 }
 0x4d6   : > { %1810 = vmatpush3.bf16.xpose.msra.mxu1 %v1098_v22  ;;  %1813 = vmatprep.mubr.msk.bf16.mxu1 %vm2278_vm0, %v2277_v0 }
 0x4d7   : > { %1811 = vmatprep.subr.bf16.mxu1 %v2277_v0 }
 0x4de   : > { %1812 = vmatpush3.bf16.xpose.msra.mxu1 %v1101_v23 }
 0x4df   : > { %1823 = vmatprep.subr.bf16.mxu1 %v2277_v0 }
 0x4ea   : > { %1145 = vrot.lane.b32.xlu0 %v2702_v26, %s2280_s10 }
 0x500   : > { %v863_v25 = vpop.xlane.xlu1 %862 }
 0x501   : > { %1968 = vrcp.f32 %v863_v25 }
 0x504   : > { %v1205_v29 = vpop.permute.xlu1 %1204 }
 0x505   : > { %v1210_v31 = vsel %vm869_vm4, %v1205_v29, 0 }
 0x50b   : > { %v1969_v27 = vpop.eup %1968 }
 0x50c   : > { %v914_v28 = vmul.f32 %v1969_v27, %v907_v62 }
 0x50e   : > { %v915_v30 = vpack.c.bf16 %v914_v28, %v914_v28 }
 0x510   : > { %1814 = vmatmul.mubr.msk.bf16.vlgmr.msra.gmra.mrb[20].mxu1 %vm807_vm2, %v915_v30 }
 0x511   : > { %1824 = vmatpush3.bf16.msra.mxu1 %v1210_v31  ;;  %1825 = vmatprep.mubr.msk.bf16.mxu1 %vm2278_vm0, %v2277_v0 }
 0x512   : > { %1837 = vmatprep.subr.bf16.mxu1 %v2277_v0 }
 0x561   : > { %v977_v32 = vpop.xlane.xlu0 %976 }
 0x562   : > { %1970 = vrcp.f32 %v977_v32 }
 0x565   : > { %v1146_v38 = vpop.permute.xlu0 %1145 }
 0x566   : > { %v1151_v42 = vsel %vm807_vm2, %v1146_v38, 0 }
 0x56c   : > { %v1971_v33 = vpop.eup %1970 }
 0x5a8   : > { %v1022_v34 = vpop.f32.mrb[16].mxu1 }
 0x5a9   : > { %v1029_v35 = vmul.f32 %v1971_v33, %v1022_v34  ;;  %v1799_v36 = vpop.f32.mrb[17].mxu1 }
 0x5aa   : > { %v1025_v39 = vpop.f32.mrb[18].mxu1 }
 0x5ab   : > { %v1030_v40 = vpack.c.bf16 %v1029_v35, %v1029_v35  ;;  %v1800_v41 = vpop.f32.mrb[19].mxu1 }
 0x5ad   : > { %1806 = vmatmul.mubr.msk.bf16.vlgmr.msra.gmra.mrb[8].mxu0 %vm807_vm2, %v1030_v40 }
 0x5ae   : > { %1818 = vmatpush3.bf16.xpose.msra.mxu0 %v1151_v42  ;;  %1819 = vmatprep.mubr.msk.bf16.mxu0 %vm2278_vm0, %v2277_v0 }
 0x5af   : > { %1829 = vmatprep.subr.bf16.mxu0 %v2277_v0 }
 0x5b5   : > { %1820 = vmatmul.mubr.msk.bf16.vlgmr.msra.gmra.mrb[12].mxu0 %vm807_vm2, %v1144_v24 }
 0x5b6   : > { %1833 = vmatprep.mubr.msk.bf16.mxu0 %vm2278_vm0, %v2277_v0 }
 0x5e3   : > { %v1137_v43 = vpop.f32.mrb[20].mxu1 }
 0x5e4   : > { %v1815_v44 = vpop.f32.mrb[21].mxu1 }
 0x5e5   : > { %v1140_v45 = vpop.f32.mrb[22].mxu1 }
 0x5e6   : > { %v1816_v46 = vpop.f32.mrb[23].mxu1 }
 0x680   : > { %v1088_v47 = vpop.f32.mrb[8].mxu0 }
 0x681   : > { %v2800_v48 = vadd.f32 %v1137_v43, %v1088_v47  ;;  %v1807_v49 = vpop.f32.mrb[9].mxu0  ;;  %v1711_v47 = vld [vmem:[%s2967_s27] ss:$0 sm:$0xff] }
 0x682   : > { %v1091_v51 = vpop.f32.mrb[10].mxu0 }
 0x683   : > { %v1808_v52 = vpop.f32.mrb[11].mxu0 }
 0x688   : > { %v1187_v53 = vpop.f32.mrb[12].mxu0 }
 0x689   : > { %v1193_v54 = vsel %vm804_vm3, %v1187_v53, -1e+09  ;;  %v1821_v55 = vpop.f32.mrb[13].mxu0 }
 0x68a   : > { %v1190_v56 = vpop.f32.mrb[14].mxu0  ;;  %v1194_v57 = vsel %vm807_vm2, %v1193_v54, -inf }
 0x68b   : > { %1195 = vmax.xlane.f32.xlu0 %v1194_v57  ;;  %v1822_v58 = vpop.f32.mrb[15].mxu0 }
 0x6a1   : > { %1311 = vrot.lane.b32.xlu0 %v2702_v26, %s2281_s14 }
 0x6a5   : > { %1370 = vrot.lane.b32.xlu0 %v2728_v50, %s2281_s14  ;;  %v1310_v50 = vpop.permute.xlu1 %1309 }
 0x718   : > { %v1196_v59 = vpop.xlane.xlu0 %1195 }
 0x719   : > { %v1197_v60 = vsub.f32 %v1193_v54, %v1196_v59 }
 0x71b   : > { %v1198_v61 = vmul.f32 1.442695, %v1197_v60 }
 0x71c   : > { %v1312_v63 = vpop.permute.xlu0 %1311 }
 0x71d   : > { %1972 = vpow2.f32 %v1198_v61  ;;  %v1317_v3 = vsel %vm807_vm2, %v1312_v63, 0 }
 0x720   : > { %v1371_v26 = vpop.permute.xlu0 %1370 }
 0x721   : > { %v1376_v4 = vsel %vm869_vm4, %v1371_v26, 0 }
 0x727   : > { %v1973_v62 = vpop.eup %1972 }
 0x728   : > { %v1200_v1 = vsel %vm807_vm2, %v1973_v62, 0.0  ;;  %v1203_v2 = vpack.c.bf16 %v1973_v62, %v1973_v62 }
 0x729   : > { %1201 = vadd.xlane.f32.xlu0 %v1200_v1 }
 0x72a   : > { %1826 = vmatmul.mubr.msk.bf16.vlgmr.msra.gmra.mrb[24].mxu1 %vm807_vm2, %v1203_v2 }
 0x72b   : > { %1838 = vmatpush3.bf16.xpose.msra.mxu1 %v1317_v3  ;;  %1839 = vmatprep.mubr.msk.bf16.mxu1 %vm2278_vm0, %v2277_v0 }
 0x72c   : > { %1843 = vmatprep.subr.bf16.mxu1 %v2277_v0 }
 0x732   : > { %1840 = vmatmul.mubr.msk.bf16.vlgmr.msra.gmra.mrb[28].mxu1 %vm807_vm2, %v1310_v50 }
 0x733   : > { %1844 = vmatpush3.bf16.msra.mxu1 %v1376_v4  ;;  %1845 = vmatprep.mubr.msk.bf16.mxu1 %vm2278_vm0, %v2277_v0 }
 0x7fd   : > { %v1246_v5 = vpop.f32.mrb[24].mxu1 }
 0x7fe   : > { %v1827_v6 = vpop.f32.mrb[25].mxu1 }
 0x7ff   : > { %v1249_v7 = vpop.f32.mrb[26].mxu1 }
 0x800   : > { %v1828_v8 = vpop.f32.mrb[27].mxu1 }
 0x805   : > { %v1353_v11 = vpop.f32.mrb[28].mxu1 }
 0x806   : > { %v1359_v12 = vsel %vm804_vm3, %v1353_v11, -1e+09  ;;  %v1841_v13 = vpop.f32.mrb[29].mxu1 }
 0x807   : > { %v1356_v14 = vpop.f32.mrb[30].mxu1  ;;  %v1360_v15 = vsel %vm807_vm2, %v1359_v12, -inf }
 0x808   : > { %1361 = vmax.xlane.f32.xlu1 %v1360_v15  ;;  %v1842_v16 = vpop.f32.mrb[31].mxu1 }
 0x819   : > { %1255 = vrot.lane.b32.xlu1 %v2753_v9, %s2280_s10 }
 0x81d   : > { %1421 = vrot.lane.b32.xlu1 %v2753_v9, %s2281_s14  ;;  %v1202_v9 = vpop.xlane.xlu0 %1201 }
 0x821   : > { %1423 = vrot.lane.b32.xlu1 %v2760_v10, %s2281_s14 }
 0x895   : > { %v1362_v17 = vpop.xlane.xlu1 %1361 }
 0x896   : > { %v1363_v18 = vsub.f32 %v1359_v12, %v1362_v17 }
 0x898   : > { %v1364_v19 = vmul.f32 1.442695, %v1363_v18 }
 0x899   : > { %v1256_v37 = vpop.permute.xlu1 %1255 }
 0x89a   : > { %1974 = vpow2.f32 %v1364_v19  ;;  %v1263_v20 = vsel %vm807_vm2, %v1256_v37, 0 }
 0x89b   : > { %1830 = vmatpush3.bf16.xpose.msra.mxu0 %v1263_v20  ;;  %1976 = vrcp.f32 %v1202_v9 }
 0x89c   : > { %1831 = vmatprep.subr.bf16.mxu0 %v2277_v0 }
 0x89d   : > { %v1422_v30 = vpop.permute.xlu1 %1421 }
 0x89e   : > { %v1429_v32 = vsel %vm807_vm2, %v1422_v30, 0 }
 0x8a4   : > { %v1975_v21 = vpop.eup %1974 }
 0x8a5   : > { %v1366_v22 = vsel %vm807_vm2, %v1975_v21, 0.0  ;;  %v1369_v23 = vpack.c.bf16 %v1975_v21, %v1975_v21  ;;  %v1977_v28 = vpop.eup %1976 }
 0x8a6   : > { %1367 = vadd.xlane.f32.xlu0 %v1366_v22  ;;  %v1253_v29 = vmul.f32 %v1977_v28, %v1246_v5 }
 0x8a7   : > { %1846 = vmatmul.mubr.msk.bf16.vlgmr.msra.gmra.mrb[32].mxu1 %vm807_vm2, %v1369_v23 }
 0x8a8   : > { %v1254_v31 = vpack.c.bf16 %v1253_v29, %v1253_v29 }
 0x8bc   : > { %1257 = vrot.lane.b32.xlu0 %v2760_v10, %s2280_s10  ;;  %v1424_v10 = vpop.permute.xlu1 %1423 }
 0x8bd   : > { %v1432_v33 = vsel %vm807_vm2, %v1424_v10, 0 }
 0x933   : > { %v1368_v24 = vpop.xlane.xlu0 %1367 }
 0x934   : > { %1978 = vrcp.f32 %v1368_v24 }
 0x937   : > { %v1258_v25 = vpop.permute.xlu0 %1257 }
 0x938   : > { %v1266_v27 = vsel %vm807_vm2, %v1258_v25, 0 }
 0x939   : > { %1832 = vmatpush3.bf16.xpose.msra.mxu0 %v1266_v27 }
 0x93a   : > { %1849 = vmatprep.subr.bf16.mxu0 %v2277_v0 }
 0x93e   : > { %v1979_v34 = vpop.eup %1978 }
 0x940   : > { %1834 = vmatmul.mubr.msk.bf16.vlgmr.msra.gmra.mrb[16].mxu0 %vm807_vm2, %v1254_v31 }
 0x941   : > { %1850 = vmatpush3.bf16.xpose.msra.mxu0 %v1429_v32  ;;  %1853 = vmatprep.mubr.msk.bf16.mxu0 %vm2278_vm0, %v2277_v0 }
 0x942   : > { %1851 = vmatprep.subr.bf16.mxu0 %v2277_v0 }
 0x949   : > { %1852 = vmatpush3.bf16.xpose.msra.mxu0 %v1432_v33 }
 0x97a   : > { %v1412_v35 = vpop.f32.mrb[32].mxu1 }
 0x97b   : > { %v1419_v36 = vmul.f32 %v1979_v34, %v1412_v35  ;;  %v1847_v38 = vpop.f32.mrb[33].mxu1 }
 0x97c   : > { %v1415_v39 = vpop.f32.mrb[34].mxu1 }
 0x97d   : > { %v1420_v40 = vpack.c.bf16 %v1419_v36, %v1419_v36  ;;  %v1848_v41 = vpop.f32.mrb[35].mxu1 }
 0x97f   : > { %1854 = vmatmul.mubr.msk.bf16.vlgmr.msra.gmra.mrb[20].mxu0 %vm807_vm2, %v1420_v40 }
 0xa13   : > { %v1302_v42 = vpop.f32.mrb[16].mxu0 }
 0xa14   : > { %v1308_v43 = vadd.f32 %v1302_v42, %v2800_v48  ;;  %v1835_v0 = vpop.f32.mrb[17].mxu0 }
 0xa15   : > { %v1305_v44 = vpop.f32.mrb[18].mxu0 }
 0xa16   : > { %v1836_v45 = vpop.f32.mrb[19].mxu0 }
 0xa52   : > { %v1468_v46 = vpop.f32.mrb[20].mxu0 }
 0xa53   : > { %v1474_v49 = vadd.f32 %v1468_v46, %v1308_v43  ;;  %v1855_v51 = vpop.f32.mrb[21].mxu0 }
 0xa54   : > { %v1471_v52 = vpop.f32.mrb[22].mxu0 }
 0xa55   : > { %v1482_v53 = vadd.f32 %v1711_v47, %v1474_v49  ;;  %v1856_v54 = vpop.f32.mrb[23].mxu0 }
 0xa57   : > { %1483 = vst.msk [vmem:[%s577_s1] sm:$0xff] %vm614_vm1, %v1482_v53 }
 0xa58   : > { %2197 = shalt.err (!%p2194_p5)
}
 0xa59   : > { %s2198_s26 = scalar_lea.hbm %s2852_s17, 128  ;;  %s2202_s10 = scalar_lea.hbm %s2969_s13, 256 }
 0xa5a   : > { %p2199_p6 = scmp.ne.s32.totalorder %s2852_s17, %s2198_s26  ;;  %p2203_p4 = scmp.lt.u32.totalorder %s2852_s17, %s2969_s13 }
 0xa5b   : > { %p2204_p0 = scmp.lt.u32.totalorder %s2202_s10, %s2198_s26  ;;  %p2206_p7 = scmp.lt.u32.totalorder %s2198_s26, %s2852_s17 }
 0xa5c   : > { %p2200_p1 = pnand %p2199_p6, %p2970_p11 }
 0xa5d   : > { %p2205_p8 = por %p2204_p0, %p2203_p4 }
 0xa5e   : > { %p2201_p12 = pneg %p2200_p1 }
 0xa5f   : > { %p2207_p10 = por %p2206_p7, %p2205_p8 }
 0xa61   : > { %p2208_p2 = pnand %p2207_p10, %p2201_p12 }
 0xa63   : > { %2211 = shalt.err (!%p2208_p2)
}
 0xa64   : > { %1877 = dma.vmem_to_hbm [thread:$0]  (%p2970_p11), %s2854_s30, 128, %s2852_s17, %s1485_s25  }
 0xa65 PF: > { %s2971_s16 = sld [smem:[#allocation21_spill]]  ;;  %s2972_s27 = sld [smem:[#allocation23_spill]] }
 0xa66   : > { %p2974_p9 = scmp.ge.s32.totalorder %s2266_s24, 2 }
 0xa6b   : > { %s1510_s12 = sand.u32 1, %s2971_s16   ;;  %p2973_p13 = scmp.ne.s32.totalorder %s2972_s27, 0 }
 0xa6c   : > { %s1511_s1 = scalar_lea.sflag [#allocation4], %s1510_s12 }
 0xa6d   : > { %p1903_p3 = pnand %p2974_p9, %p2973_p13 }
 0xa6f   : > { %2249 = dma.done.wait (!%p1903_p3), %s1511_s1, 128  }
 0xa70   : > { %2251 = vsyncadd (!%p1903_p3), %s1511_s1, 4294967168  ;;  %s2975_s24 = sld [smem:[#allocation24_spill]]  ;;  %s2976_s15 = sld [smem:[#allocation22_spill]] }
 0xa71   : > { %s2977_s23 = sld [smem:[#allocation26_spill]]  ;;  %s2978_s21 = smov %s2258_s22 }
 0xa76   : > { %p32_p5 = scmp.ge.s32.totalorder %s2975_s24, 4   ;;  %s2979_s22 = smov %s2976_s15 }
 0xa78   :  { %34 = sbr.rel (!%p32_p5) target bundleno = 17 (0x11), region = 162 }
 0xa7f   :  { %1516 = vsyncpa [#allocation3], 1 }
 0xa80   :  { %1518 = vsyncpa [#allocation3 + $0x1], 1 }
 0xa81   :  { %1519 = vsyncpa [#allocation6], 1 }
 0xa82   :  { %1521 = vsyncpa [#allocation6 + $0x1], 1 }
 0xa83   :  { %1522 = vsyncpa [#allocation9], 1 }
 0xa84   :  { %1524 = vsyncpa [#allocation9 + $0x1], 1 }
 0xa85   :  { %1525 = vsyncpa [#allocation12], 1 }
 0xa86   :  { %1526 = vsyncpa [#allocation4], 1 }
 0xa87   :  { %1528 = vsyncpa [#allocation4 + $0x1], 1 }

</bundles_post_ra>
